<compile_context>
chip_gen: v7x
topology: tpu7x:2x2x1
jax: 0.10.0
libtpu: 0.0.40
codegen_flags: <defaults>
</compile_context>

<pallas_src>
import functools

import jax
import jax.numpy as jnp
from jax.experimental import pallas as pl
from jax.experimental.pallas import tpu as pltpu


def _group_conv_kernel(x_ref, w_ref, b_ref, gamma_ref, beta_ref, o_ref, *,
                       K, Wp, H_out, W_out, act_norm, eps, neg_slope):
    """One grid step = one group g x one block of Nb samples.

    x_ref:     (Nb, 1, Cin_g, Lflat)          zero-padded, spatially flattened
                                              input rows of group g (pitch Wp)
    w_ref:     (1, Cout_g, K*K*Cin_g)         weights of group g, tap-major cols
    b_ref:     (1, Cout_g, 1)                 conv bias of group g (f32)
    gamma_ref: (1, Cout_g, 1)                 GroupNorm scale of group g (f32)
    beta_ref:  (1, Cout_g, 1)                 GroupNorm shift of group g (f32)
    o_ref:     (Nb, 1, Cout_g, H_out*W_out)   output, spatial on the lane axis
    """
    Nb = x_ref.shape[0]
    cin_g = x_ref.shape[2]
    cout_g = o_ref.shape[2]
    HW = H_out * W_out
    W_eff = H_out * Wp            # accumulator width (pitch Wp, cropped at the end)

    # Hoisted out of the per-sample loop: weight tap slices + per-group params.
    w = w_ref[0]                                                   # (Cout_g, K*K*Cin_g)
    w_taps = [w[:, t * cin_g:(t + 1) * cin_g] for t in range(K * K)]
    bias = b_ref[0]                                                # (Cout_g, 1) f32
    if act_norm:
        gamma = gamma_ref[0]                                       # (Cout_g, 1) f32
        beta = beta_ref[0]
        inv_cnt = 1.0 / float(cout_g * HW)

    def body(n, carry):
        # Tap-accumulated conv: each tap operand is a static lane-slice of the
        # flattened (pitch-Wp) input row -- no per-tap sublane<->lane relayout,
        # no im2col copy.  f32 accumulation regardless of operand dtype.
        acc = None
        for t in range(K * K):
            kh, kw = divmod(t, K)
            shift = kh * Wp + kw
            patch = x_ref[n, 0, :, shift:shift + W_eff]            # (Cin_g, W_eff)
            part = jnp.dot(w_taps[t], patch,
                           preferred_element_type=jnp.float32)     # (Cout_g, W_eff)
            acc = part if acc is None else acc + part

        # Drop the K-1 spill columns of every row: pitch Wp -> W_out.  One
        # relayout per (sample, group) instead of K*K per-tap reshapes; keeps
        # the store lane-dense at H_out*W_out.
        y = acc.reshape(cout_g, H_out, Wp)[:, :, :W_out].reshape(cout_g, HW)
        y = y + bias

        if act_norm:
            # GroupNorm over exactly this (sample, group) region.  Two-pass
            # (mean, then centered sum of squares) in f32 to avoid the
            # E[x^2]-E[x]^2 cancellation.
            mean = jnp.sum(y) * inv_cnt
            centered = y - mean
            var = jnp.sum(centered * centered) * inv_cnt
            z = centered * jax.lax.rsqrt(var + eps) * gamma + beta
            y = jnp.where(z > 0, z, neg_slope * z)                 # LeakyReLU(0.2)

        o_ref[n, 0, :, :] = y.astype(o_ref.dtype)
        return carry

    jax.lax.fori_loop(0, Nb, body, 0, unroll=True)


def _round_up(v, m):
    return -(-v // m) * m


def _pick_batch_block(N, per_sample_bytes, budget_bytes, max_nb):
    """Largest divisor of N (capped at max_nb) whose footprint fits the budget."""
    nb = 1
    for cand in range(1, min(N, max_nb) + 1):
        if N % cand == 0 and cand * per_sample_bytes <= budget_bytes:
            nb = cand
    return nb


def _vmem_budget():
    """(vmem_limit_bytes, per-step block budget) derived from the actual chip."""
    cap = 64 << 20                     # conservative default (v7x per-core VMEM)
    try:
        cap = int(getattr(pltpu.get_tpu_info(), "vmem_capacity_bytes", cap)) or cap
    except Exception:
        pass
    vmem_limit = min((cap * 3) // 4, 96 << 20)   # ~48 MiB on v7x, 96 MiB on v5e/v6e
    budget = vmem_limit // 2 - (1 << 20)         # headroom: weights/params/compiler scratch
    return vmem_limit, max(budget, 1 << 20)


def group_conv2d(x, weight, bias, gamma=None, beta=None, *, stride=1, padding=0,
                 groups=1, act_norm=False, compute_dtype=None, eps=1e-5):
    """Forward of GroupConv2d. x: (N, Cin, H, W) NCHW, weight: (Cout, Cin/G, K, K) OIHW."""
    N, Cin, H, W = x.shape
    Cout, cin_g_w, K, K2 = weight.shape
    assert K == K2
    if Cin % groups != 0:              # matches the PyTorch module's fallback
        groups = 1
    G = groups
    cin_g = Cin // G
    cout_g = Cout // G
    assert cin_g_w == cin_g and Cout % G == 0
    assert stride == 1, "only stride=1 implemented"  # TODO(synk): stride > 1 not implemented
    H_out = H + 2 * padding - K + 1
    W_out = W + 2 * padding - K + 1
    assert H_out > 0 and W_out > 0
    Hp, Wp = H + 2 * padding, W + 2 * padding
    Lflat = (Hp + 1) * Wp              # one extra zero row keeps every tap slice in bounds
    HW = H_out * W_out
    W_eff = H_out * Wp
    out_dtype = x.dtype

    # Optional bf16 MXU path: cast the streamed operands once here (halves
    # their HBM traffic); accumulation + GroupNorm stay f32 inside the kernel.
    if compute_dtype is not None and compute_dtype != x.dtype:
        x = x.astype(compute_dtype)
        weight = weight.astype(compute_dtype)

    # Single pad pass (spatial zero pad + one trailing zero row), then free
    # contiguous reshapes: (N, Cin, Hp+1, Wp) -> (N, G, Cin_g, (Hp+1)*Wp).
    # The kernel therefore sees a lane-dense flat spatial axis.
    # TODO(synk): fold the zero padding into the kernel (masked tap slices on
    # the unpadded flat input) to save this extra HBM read+write of x.
    xp = jnp.pad(x, ((0, 0), (0, 0), (padding, padding + 1), (padding, padding)))
    xp = xp.reshape(N, G, cin_g, Lflat)

    # weight (Cout, Cin_g, K, K) -> (G, Cout_g, K*K*Cin_g) with tap-major column
    # order ((kh*K + kw)*Cin_g + cin) matching the per-tap slices in the kernel.
    wg = weight.reshape(G, cout_g, cin_g, K, K).transpose(0, 1, 3, 4, 2)
    wg = wg.reshape(G, cout_g, K * K * cin_g)

    if gamma is None:
        gamma = jnp.ones((Cout,), jnp.float32)
    if beta is None:
        beta = jnp.zeros((Cout,), jnp.float32)
    bg = bias.astype(jnp.float32).reshape(G, cout_g, 1)
    gg = gamma.astype(jnp.float32).reshape(G, cout_g, 1)
    btg = beta.astype(jnp.float32).reshape(G, cout_g, 1)

    # ---- per-chip VMEM budgeting -----------------------------------------
    vmem_limit, budget = _vmem_budget()
    in_item = jnp.dtype(x.dtype).itemsize
    out_item = jnp.dtype(out_dtype).itemsize
    sub_in = 8 * max(1, 4 // in_item)
    sub_out = 8 * max(1, 4 // out_item)
    in_blk = _round_up(cin_g, sub_in) * _round_up(Lflat, 128) * in_item
    out_blk = _round_up(cout_g, sub_out) * _round_up(HW, 128) * out_item
    temps = 3 * _round_up(cout_g, 8) * _round_up(W_eff, 128) * 4   # acc + crop + slack (f32)
    per_sample = 2 * in_blk + 2 * out_blk + temps                  # x/out double-buffered

    max_nb = 8
    if G == 1 and N >= 2:
        max_nb = max(1, min(max_nb, N // 2))   # keep >= 2 grid steps for v7x's 2 TCs
    Nb = _pick_batch_block(N, per_sample, budget, max_nb)
    # TODO(synk): for large Cin_g / spatial planes add a spatial-tile grid axis
    # (K-1 row halo, two-phase GroupNorm) instead of a full plane per sample.
    # TODO(synk): batch the per-tap matmul across Nb (RHS (Cin_g, Nb*W_eff)) --
    # needs a channel-major HBM layout, not worth the extra transpose pass here.

    kernel = functools.partial(_group_conv_kernel, K=K, Wp=Wp, H_out=H_out,
                               W_out=W_out, act_norm=act_norm, eps=eps,
                               neg_slope=0.2)

    out = pl.pallas_call(
        kernel,
        out_shape=jax.ShapeDtypeStruct((N, G, cout_g, HW), out_dtype),
        grid=(G, N // Nb),             # group outer, batch inner -> group params stay resident
        in_specs=[
            pl.BlockSpec((Nb, 1, cin_g, Lflat), lambda g, n: (n, g, 0, 0)),
            pl.BlockSpec((1, cout_g, K * K * cin_g), lambda g, n: (g, 0, 0)),
            pl.BlockSpec((1, cout_g, 1), lambda g, n: (g, 0, 0)),
            pl.BlockSpec((1, cout_g, 1), lambda g, n: (g, 0, 0)),
            pl.BlockSpec((1, cout_g, 1), lambda g, n: (g, 0, 0)),
        ],
        out_specs=pl.BlockSpec((Nb, 1, cout_g, HW), lambda g, n: (n, g, 0, 0)),
        compiler_params=pltpu.CompilerParams(
            dimension_semantics=("parallel", "parallel"),
            vmem_limit_bytes=int(vmem_limit)),
    )(xp, wg, bg, gg, btg)

    # (N, G, Cout_g, H_out*W_out) -> (N, Cout, H_out, W_out): contiguous split, no transpose.
    return out.reshape(N, Cout, H_out, W_out)


def _reference(x, weight, bias, gamma, beta, padding, groups, act_norm):
    """Pure-JAX reference with the same semantics as the PyTorch module."""
    y = jax.lax.conv_general_dilated(
        x, weight, (1, 1), [(padding, padding), (padding, padding)],
        dimension_numbers=("NCHW", "OIHW", "NCHW"),
        feature_group_count=groups) + bias[None, :, None, None]
    if act_norm:
        n, c, h, w = y.shape
        yr = y.reshape(n, groups, c // groups, h, w)
        mean = yr.mean(axis=(2, 3, 4), keepdims=True)
        var = ((yr - mean) ** 2).mean(axis=(2, 3, 4), keepdims=True)
        yr = (yr - mean) * jax.lax.rsqrt(var + 1e-5)
        y = yr.reshape(n, c, h, w) * gamma[None, :, None, None] + beta[None, :, None, None]
        y = jnp.where(y > 0, y, 0.2 * y)
    return y


if __name__ == "__main__":
    key = jax.random.PRNGKey(0)
    k1, k2, k3, k4, k5 = jax.random.split(key, 5)

    # GroupConv2d(4, 8, kernel_size=3, stride=1, padding=1, groups=2, act_norm=True)
    N, Cin, H, W = 2, 4, 16, 16
    Cout, K, groups, padding = 8, 3, 2, 1

    x = jax.random.normal(k1, (N, Cin, H, W), jnp.float32)
    weight = jax.random.normal(k2, (Cout, Cin // groups, K, K), jnp.float32) * 0.1
    bias = jax.random.normal(k3, (Cout,), jnp.float32) * 0.1
    gamma = jnp.ones((Cout,), jnp.float32)    # GroupNorm default affine init
    beta = jnp.zeros((Cout,), jnp.float32)

    # 1) f32 MXU path — matches module semantics (up to sum order).
    y = group_conv2d(x, weight, bias, gamma, beta, stride=1, padding=padding,
                     groups=groups, act_norm=True)
    y = jax.block_until_ready(y)
    y_ref = _reference(x, weight, bias, gamma, beta, padding, groups, True)
    err = float(jnp.max(jnp.abs(y - y_ref)))
    assert jnp.allclose(y, y_ref, atol=1e-4, rtol=1e-4), f"f32 path max err {err}"

    # 2) bf16 MXU operands (f32 accumulate + f32 GroupNorm) — fast path.
    y_bf = group_conv2d(x, weight, bias, gamma, beta, stride=1, padding=padding,
                        groups=groups, act_norm=True, compute_dtype=jnp.bfloat16)
    y_bf = jax.block_until_ready(y_bf)
    err_bf = float(jnp.max(jnp.abs(y_bf - y_ref)))
    assert jnp.allclose(y_bf, y_ref, atol=5e-2, rtol=5e-2), f"bf16 path max err {err_bf}"

    # 3) plain grouped conv branch: act_norm=False, padding=0, groups=1.
    w2 = jax.random.normal(k4, (Cout, Cin, K, K), jnp.float32) * 0.1
    b2 = jax.random.normal(k5, (Cout,), jnp.float32) * 0.1
    y2 = group_conv2d(x, w2, b2, stride=1, padding=0, groups=1, act_norm=False)
    y2 = jax.block_until_ready(y2)
    y2_ref = _reference(x, w2, b2, jnp.ones((Cout,)), jnp.zeros((Cout,)), 0, 1, False)
    err2 = float(jnp.max(jnp.abs(y2 - y2_ref)))
    assert jnp.allclose(y2, y2_ref, atol=1e-4, rtol=1e-4), f"no-norm path max err {err2}"

    print("KERNEL_OK")
</pallas_src>

<mosaic_0001>
module attributes {stable_mosaic.version = 11 : i64} {
  func.func @_group_conv_kernel(%arg0: i32, %arg1: i32, %arg2: memref<2x1x2x342xf32, #tpu.memory_space<vmem>>, %arg3: memref<1x4x18xf32, #tpu.memory_space<vmem>>, %arg4: memref<1x4x1xf32, #tpu.memory_space<vmem>>, %arg5: memref<1x4x1xf32, #tpu.memory_space<vmem>>, %arg6: memref<1x4x1xf32, #tpu.memory_space<vmem>>, %arg7: memref<2x1x4x256xf32, #tpu.memory_space<vmem>>) attributes {dimension_semantics = [#tpu.dimension_semantics<parallel>, #tpu.dimension_semantics<parallel>], iteration_bounds = array<i64: 2, 1>, scalar_prefetch = 0 : i64, scratch_operands = 0 : i64, tpu.core_type = #tpu.core_type<tc>, window_params = [{transform_indices = @transform_0, window_bounds = array<i64: 2, 1, 2, 342>}, {transform_indices = @transform_1, window_bounds = array<i64: 1, 4, 18>}, {transform_indices = @transform_2, window_bounds = array<i64: 1, 4, 1>}, {transform_indices = @transform_3, window_bounds = array<i64: 1, 4, 1>}, {transform_indices = @transform_4, window_bounds = array<i64: 1, 4, 1>}, {transform_indices = @transform_5, window_bounds = array<i64: 2, 1, 4, 256>}]} {
    %c0 = arith.constant 0 : index
    %c0_0 = arith.constant 0 : index
    %c0_1 = arith.constant 0 : index
    %0 = vector.load %arg3[%c0, %c0_0, %c0_1] : memref<1x4x18xf32, #tpu.memory_space<vmem>>, vector<1x4x18xf32>
    %1 = vector.shape_cast %0 : vector<1x4x18xf32> to vector<4x18xf32>
    %2 = vector.extract_strided_slice %1 {offsets = [0, 0], sizes = [4, 2], strides = [1, 1]} : vector<4x18xf32> to vector<4x2xf32>
    %3 = vector.extract_strided_slice %1 {offsets = [0, 2], sizes = [4, 2], strides = [1, 1]} : vector<4x18xf32> to vector<4x2xf32>
    %4 = vector.extract_strided_slice %1 {offsets = [0, 4], sizes = [4, 2], strides = [1, 1]} : vector<4x18xf32> to vector<4x2xf32>
    %5 = vector.extract_strided_slice %1 {offsets = [0, 6], sizes = [4, 2], strides = [1, 1]} : vector<4x18xf32> to vector<4x2xf32>
    %6 = vector.extract_strided_slice %1 {offsets = [0, 8], sizes = [4, 2], strides = [1, 1]} : vector<4x18xf32> to vector<4x2xf32>
    %7 = vector.extract_strided_slice %1 {offsets = [0, 10], sizes = [4, 2], strides = [1, 1]} : vector<4x18xf32> to vector<4x2xf32>
    %8 = vector.extract_strided_slice %1 {offsets = [0, 12], sizes = [4, 2], strides = [1, 1]} : vector<4x18xf32> to vector<4x2xf32>
    %9 = vector.extract_strided_slice %1 {offsets = [0, 14], sizes = [4, 2], strides = [1, 1]} : vector<4x18xf32> to vector<4x2xf32>
    %10 = vector.extract_strided_slice %1 {offsets = [0, 16], sizes = [4, 2], strides = [1, 1]} : vector<4x18xf32> to vector<4x2xf32>
    %c0_2 = arith.constant 0 : index
    %c0_3 = arith.constant 0 : index
    %c0_4 = arith.constant 0 : index
    %11 = vector.load %arg4[%c0_2, %c0_3, %c0_4] : memref<1x4x1xf32, #tpu.memory_space<vmem>>, vector<1x4x1xf32>
    %12 = vector.shape_cast %11 : vector<1x4x1xf32> to vector<4x1xf32>
    %c0_5 = arith.constant 0 : index
    %c0_6 = arith.constant 0 : index
    %c0_7 = arith.constant 0 : index
    %13 = vector.load %arg5[%c0_5, %c0_6, %c0_7] : memref<1x4x1xf32, #tpu.memory_space<vmem>>, vector<1x4x1xf32>
    %14 = vector.shape_cast %13 : vector<1x4x1xf32> to vector<4x1xf32>
    %c0_8 = arith.constant 0 : index
    %c0_9 = arith.constant 0 : index
    %c0_10 = arith.constant 0 : index
    %15 = vector.load %arg6[%c0_8, %c0_9, %c0_10] : memref<1x4x1xf32, #tpu.memory_space<vmem>>, vector<1x4x1xf32>
    %16 = vector.shape_cast %15 : vector<1x4x1xf32> to vector<4x1xf32>
    %c0_i32 = arith.constant 0 : i32
    %17 = arith.index_cast %c0_i32 : i32 to index
    %c0_11 = arith.constant 0 : index
    %c0_12 = arith.constant 0 : index
    %c0_13 = arith.constant 0 : index
    %18 = vector.load %arg2[%17, %c0_11, %c0_12, %c0_13] : memref<2x1x2x342xf32, #tpu.memory_space<vmem>>, vector<1x1x2x288xf32>
    %19 = vector.shape_cast %18 : vector<1x1x2x288xf32> to vector<2x288xf32>
    %cst = arith.constant dense<0.000000e+00> : vector<4x288xf32>
    %20 = tpu.matmul %2, %19, %cst {dimension_numbers = #tpu.dot_dimension_numbers<[1], [0], [0], [1], [0, 0, 1, 1], [], []>} : vector<4x2xf32>, vector<2x288xf32>, vector<4x288xf32> -> vector<4x288xf32>
    %21 = arith.index_cast %c0_i32 : i32 to index
    %c0_14 = arith.constant 0 : index
    %c0_15 = arith.constant 0 : index
    %c1 = arith.constant 1 : index
    %22 = vector.load %arg2[%21, %c0_14, %c0_15, %c1] : memref<2x1x2x342xf32, #tpu.memory_space<vmem>>, vector<1x1x2x288xf32>
    %23 = vector.shape_cast %22 : vector<1x1x2x288xf32> to vector<2x288xf32>
    %cst_16 = arith.constant dense<0.000000e+00> : vector<4x288xf32>
    %24 = tpu.matmul %3, %23, %cst_16 {dimension_numbers = #tpu.dot_dimension_numbers<[1], [0], [0], [1], [0, 0, 1, 1], [], []>} : vector<4x2xf32>, vector<2x288xf32>, vector<4x288xf32> -> vector<4x288xf32>
    %25 = arith.addf %20, %24 : vector<4x288xf32>
    %26 = arith.index_cast %c0_i32 : i32 to index
    %c0_17 = arith.constant 0 : index
    %c0_18 = arith.constant 0 : index
    %c2 = arith.constant 2 : index
    %27 = vector.load %arg2[%26, %c0_17, %c0_18, %c2] : memref<2x1x2x342xf32, #tpu.memory_space<vmem>>, vector<1x1x2x288xf32>
    %28 = vector.shape_cast %27 : vector<1x1x2x288xf32> to vector<2x288xf32>
    %cst_19 = arith.constant dense<0.000000e+00> : vector<4x288xf32>
    %29 = tpu.matmul %4, %28, %cst_19 {dimension_numbers = #tpu.dot_dimension_numbers<[1], [0], [0], [1], [0, 0, 1, 1], [], []>} : vector<4x2xf32>, vector<2x288xf32>, vector<4x288xf32> -> vector<4x288xf32>
    %30 = arith.addf %25, %29 : vector<4x288xf32>
    %31 = arith.index_cast %c0_i32 : i32 to index
    %c0_20 = arith.constant 0 : index
    %c0_21 = arith.constant 0 : index
    %c18 = arith.constant 18 : index
    %32 = vector.load %arg2[%31, %c0_20, %c0_21, %c18] : memref<2x1x2x342xf32, #tpu.memory_space<vmem>>, vector<1x1x2x288xf32>
    %33 = vector.shape_cast %32 : vector<1x1x2x288xf32> to vector<2x288xf32>
    %cst_22 = arith.constant dense<0.000000e+00> : vector<4x288xf32>
    %34 = tpu.matmul %5, %33, %cst_22 {dimension_numbers = #tpu.dot_dimension_numbers<[1], [0], [0], [1], [0, 0, 1, 1], [], []>} : vector<4x2xf32>, vector<2x288xf32>, vector<4x288xf32> -> vector<4x288xf32>
    %35 = arith.addf %30, %34 : vector<4x288xf32>
    %36 = arith.index_cast %c0_i32 : i32 to index
    %c0_23 = arith.constant 0 : index
    %c0_24 = arith.constant 0 : index
    %c19 = arith.constant 19 : index
    %37 = vector.load %arg2[%36, %c0_23, %c0_24, %c19] : memref<2x1x2x342xf32, #tpu.memory_space<vmem>>, vector<1x1x2x288xf32>
    %38 = vector.shape_cast %37 : vector<1x1x2x288xf32> to vector<2x288xf32>
    %cst_25 = arith.constant dense<0.000000e+00> : vector<4x288xf32>
    %39 = tpu.matmul %6, %38, %cst_25 {dimension_numbers = #tpu.dot_dimension_numbers<[1], [0], [0], [1], [0, 0, 1, 1], [], []>} : vector<4x2xf32>, vector<2x288xf32>, vector<4x288xf32> -> vector<4x288xf32>
    %40 = arith.addf %35, %39 : vector<4x288xf32>
    %41 = arith.index_cast %c0_i32 : i32 to index
    %c0_26 = arith.constant 0 : index
    %c0_27 = arith.constant 0 : index
    %c20 = arith.constant 20 : index
    %42 = vector.load %arg2[%41, %c0_26, %c0_27, %c20] : memref<2x1x2x342xf32, #tpu.memory_space<vmem>>, vector<1x1x2x288xf32>
    %43 = vector.shape_cast %42 : vector<1x1x2x288xf32> to vector<2x288xf32>
    %cst_28 = arith.constant dense<0.000000e+00> : vector<4x288xf32>
    %44 = tpu.matmul %7, %43, %cst_28 {dimension_numbers = #tpu.dot_dimension_numbers<[1], [0], [0], [1], [0, 0, 1, 1], [], []>} : vector<4x2xf32>, vector<2x288xf32>, vector<4x288xf32> -> vector<4x288xf32>
    %45 = arith.addf %40, %44 : vector<4x288xf32>
    %46 = arith.index_cast %c0_i32 : i32 to index
    %c0_29 = arith.constant 0 : index
    %c0_30 = arith.constant 0 : index
    %c36 = arith.constant 36 : index
    %47 = vector.load %arg2[%46, %c0_29, %c0_30, %c36] : memref<2x1x2x342xf32, #tpu.memory_space<vmem>>, vector<1x1x2x288xf32>
    %48 = vector.shape_cast %47 : vector<1x1x2x288xf32> to vector<2x288xf32>
    %cst_31 = arith.constant dense<0.000000e+00> : vector<4x288xf32>
    %49 = tpu.matmul %8, %48, %cst_31 {dimension_numbers = #tpu.dot_dimension_numbers<[1], [0], [0], [1], [0, 0, 1, 1], [], []>} : vector<4x2xf32>, vector<2x288xf32>, vector<4x288xf32> -> vector<4x288xf32>
    %50 = arith.addf %45, %49 : vector<4x288xf32>
    %51 = arith.index_cast %c0_i32 : i32 to index
    %c0_32 = arith.constant 0 : index
    %c0_33 = arith.constant 0 : index
    %c37 = arith.constant 37 : index
    %52 = vector.load %arg2[%51, %c0_32, %c0_33, %c37] : memref<2x1x2x342xf32, #tpu.memory_space<vmem>>, vector<1x1x2x288xf32>
    %53 = vector.shape_cast %52 : vector<1x1x2x288xf32> to vector<2x288xf32>
    %cst_34 = arith.constant dense<0.000000e+00> : vector<4x288xf32>
    %54 = tpu.matmul %9, %53, %cst_34 {dimension_numbers = #tpu.dot_dimension_numbers<[1], [0], [0], [1], [0, 0, 1, 1], [], []>} : vector<4x2xf32>, vector<2x288xf32>, vector<4x288xf32> -> vector<4x288xf32>
    %55 = arith.addf %50, %54 : vector<4x288xf32>
    %56 = arith.index_cast %c0_i32 : i32 to index
    %c0_35 = arith.constant 0 : index
    %c0_36 = arith.constant 0 : index
    %c38 = arith.constant 38 : index
    %57 = vector.load %arg2[%56, %c0_35, %c0_36, %c38] : memref<2x1x2x342xf32, #tpu.memory_space<vmem>>, vector<1x1x2x288xf32>
    %58 = vector.shape_cast %57 : vector<1x1x2x288xf32> to vector<2x288xf32>
    %cst_37 = arith.constant dense<0.000000e+00> : vector<4x288xf32>
    %59 = tpu.matmul %10, %58, %cst_37 {dimension_numbers = #tpu.dot_dimension_numbers<[1], [0], [0], [1], [0, 0, 1, 1], [], []>} : vector<4x2xf32>, vector<2x288xf32>, vector<4x288xf32> -> vector<4x288xf32>
    %60 = arith.addf %55, %59 : vector<4x288xf32>
    %61 = vector.shape_cast %60 : vector<4x288xf32> to vector<4x16x18xf32>
    %62 = vector.extract_strided_slice %61 {offsets = [0, 0, 0], sizes = [4, 16, 16], strides = [1, 1, 1]} : vector<4x16x18xf32> to vector<4x16x16xf32>
    %63 = vector.shape_cast %62 : vector<4x16x16xf32> to vector<4x256xf32>
    %64 = vector.broadcast %12 : vector<4x1xf32> to vector<4x256xf32>
    %65 = arith.addf %63, %64 : vector<4x256xf32>
    %66 = vector.shape_cast %65 : vector<4x256xf32> to vector<1x4x256xf32>
    %cst_38 = arith.constant dense<0.000000e+00> : vector<1xf32>
    %67 = vector.multi_reduction <add>, %66, %cst_38 [1, 2] : vector<1x4x256xf32> to vector<1xf32>
    %68 = vector.shape_cast %67 : vector<1xf32> to vector<1x1x1xf32>
    %69 = vector.extract %68[0, 0, 0] : f32 from vector<1x1x1xf32>
    %cst_39 = arith.constant 9.765625E-4 : f32
    %70 = arith.mulf %69, %cst_39 : f32
    %71 = vector.broadcast %70 : f32 to vector<4x256xf32>
    %72 = arith.subf %65, %71 : vector<4x256xf32>
    %73 = arith.mulf %72, %72 : vector<4x256xf32>
    %74 = vector.shape_cast %73 : vector<4x256xf32> to vector<1x4x256xf32>
    %cst_40 = arith.constant dense<0.000000e+00> : vector<1xf32>
    %75 = vector.multi_reduction <add>, %74, %cst_40 [1, 2] : vector<1x4x256xf32> to vector<1xf32>
    %76 = vector.shape_cast %75 : vector<1xf32> to vector<1x1x1xf32>
    %77 = vector.extract %76[0, 0, 0] : f32 from vector<1x1x1xf32>
    %cst_41 = arith.constant 9.765625E-4 : f32
    %78 = arith.mulf %77, %cst_41 : f32
    %cst_42 = arith.constant 9.99999974E-6 : f32
    %79 = arith.addf %78, %cst_42 : f32
    %80 = math.rsqrt %79 : f32
    %81 = vector.broadcast %80 : f32 to vector<4x256xf32>
    %82 = arith.mulf %72, %81 : vector<4x256xf32>
    %83 = vector.broadcast %14 : vector<4x1xf32> to vector<4x256xf32>
    %84 = arith.mulf %82, %83 : vector<4x256xf32>
    %85 = vector.broadcast %16 : vector<4x1xf32> to vector<4x256xf32>
    %86 = arith.addf %84, %85 : vector<4x256xf32>
    %cst_43 = arith.constant 0.000000e+00 : f32
    %87 = vector.broadcast %cst_43 : f32 to vector<4x256xf32>
    %88 = arith.cmpf ogt, %86, %87 : vector<4x256xf32>
    %cst_44 = arith.constant 2.000000e-01 : f32
    %89 = vector.broadcast %cst_44 : f32 to vector<4x256xf32>
    %90 = arith.mulf %89, %86 : vector<4x256xf32>
    %91 = arith.select %88, %86, %90 : vector<4x256xi1>, vector<4x256xf32>
    %92 = arith.index_cast %c0_i32 : i32 to index
    %c0_45 = arith.constant 0 : index
    %c0_46 = arith.constant 0 : index
    %c0_47 = arith.constant 0 : index
    %93 = vector.load %arg7[%92, %c0_45, %c0_46, %c0_47] : memref<2x1x4x256xf32, #tpu.memory_space<vmem>>, vector<1x1x4x256xf32>
    %94 = vector.shape_cast %93 : vector<1x1x4x256xf32> to vector<4x256xf32>
    %95 = vector.shape_cast %91 : vector<4x256xf32> to vector<1x1x4x256xf32>
    tpu.vector_store %arg7[%92, %c0_45, %c0_46, %c0_47], %95 {strides = array<i32>} : memref<2x1x4x256xf32, #tpu.memory_space<vmem>>, vector<1x1x4x256xf32>,
    %c1_i32 = arith.constant 1 : i32
    %96 = arith.index_cast %c1_i32 : i32 to index
    %c0_48 = arith.constant 0 : index
    %c0_49 = arith.constant 0 : index
    %c0_50 = arith.constant 0 : index
    %97 = vector.load %arg2[%96, %c0_48, %c0_49, %c0_50] : memref<2x1x2x342xf32, #tpu.memory_space<vmem>>, vector<1x1x2x288xf32>
    %98 = vector.shape_cast %97 : vector<1x1x2x288xf32> to vector<2x288xf32>
    %cst_51 = arith.constant dense<0.000000e+00> : vector<4x288xf32>
    %99 = tpu.matmul %2, %98, %cst_51 {dimension_numbers = #tpu.dot_dimension_numbers<[1], [0], [0], [1], [0, 0, 1, 1], [], []>} : vector<4x2xf32>, vector<2x288xf32>, vector<4x288xf32> -> vector<4x288xf32>
    %100 = arith.index_cast %c1_i32 : i32 to index
    %c0_52 = arith.constant 0 : index
    %c0_53 = arith.constant 0 : index
    %c1_54 = arith.constant 1 : index
    %101 = vector.load %arg2[%100, %c0_52, %c0_53, %c1_54] : memref<2x1x2x342xf32, #tpu.memory_space<vmem>>, vector<1x1x2x288xf32>
    %102 = vector.shape_cast %101 : vector<1x1x2x288xf32> to vector<2x288xf32>
    %cst_55 = arith.constant dense<0.000000e+00> : vector<4x288xf32>
    %103 = tpu.matmul %3, %102, %cst_55 {dimension_numbers = #tpu.dot_dimension_numbers<[1], [0], [0], [1], [0, 0, 1, 1], [], []>} : vector<4x2xf32>, vector<2x288xf32>, vector<4x288xf32> -> vector<4x288xf32>
    %104 = arith.addf %99, %103 : vector<4x288xf32>
    %105 = arith.index_cast %c1_i32 : i32 to index
    %c0_56 = arith.constant 0 : index
    %c0_57 = arith.constant 0 : index
    %c2_58 = arith.constant 2 : index
    %106 = vector.load %arg2[%105, %c0_56, %c0_57, %c2_58] : memref<2x1x2x342xf32, #tpu.memory_space<vmem>>, vector<1x1x2x288xf32>
    %107 = vector.shape_cast %106 : vector<1x1x2x288xf32> to vector<2x288xf32>
    %cst_59 = arith.constant dense<0.000000e+00> : vector<4x288xf32>
    %108 = tpu.matmul %4, %107, %cst_59 {dimension_numbers = #tpu.dot_dimension_numbers<[1], [0], [0], [1], [0, 0, 1, 1], [], []>} : vector<4x2xf32>, vector<2x288xf32>, vector<4x288xf32> -> vector<4x288xf32>
    %109 = arith.addf %104, %108 : vector<4x288xf32>
    %110 = arith.index_cast %c1_i32 : i32 to index
    %c0_60 = arith.constant 0 : index
    %c0_61 = arith.constant 0 : index
    %c18_62 = arith.constant 18 : index
    %111 = vector.load %arg2[%110, %c0_60, %c0_61, %c18_62] : memref<2x1x2x342xf32, #tpu.memory_space<vmem>>, vector<1x1x2x288xf32>
    %112 = vector.shape_cast %111 : vector<1x1x2x288xf32> to vector<2x288xf32>
    %cst_63 = arith.constant dense<0.000000e+00> : vector<4x288xf32>
    %113 = tpu.matmul %5, %112, %cst_63 {dimension_numbers = #tpu.dot_dimension_numbers<[1], [0], [0], [1], [0, 0, 1, 1], [], []>} : vector<4x2xf32>, vector<2x288xf32>, vector<4x288xf32> -> vector<4x288xf32>
    %114 = arith.addf %109, %113 : vector<4x288xf32>
    %115 = arith.index_cast %c1_i32 : i32 to index
    %c0_64 = arith.constant 0 : index
    %c0_65 = arith.constant 0 : index
    %c19_66 = arith.constant 19 : index
    %116 = vector.load %arg2[%115, %c0_64, %c0_65, %c19_66] : memref<2x1x2x342xf32, #tpu.memory_space<vmem>>, vector<1x1x2x288xf32>
    %117 = vector.shape_cast %116 : vector<1x1x2x288xf32> to vector<2x288xf32>
    %cst_67 = arith.constant dense<0.000000e+00> : vector<4x288xf32>
    %118 = tpu.matmul %6, %117, %cst_67 {dimension_numbers = #tpu.dot_dimension_numbers<[1], [0], [0], [1], [0, 0, 1, 1], [], []>} : vector<4x2xf32>, vector<2x288xf32>, vector<4x288xf32> -> vector<4x288xf32>
    %119 = arith.addf %114, %118 : vector<4x288xf32>
    %120 = arith.index_cast %c1_i32 : i32 to index
    %c0_68 = arith.constant 0 : index
    %c0_69 = arith.constant 0 : index
    %c20_70 = arith.constant 20 : index
    %121 = vector.load %arg2[%120, %c0_68, %c0_69, %c20_70] : memref<2x1x2x342xf32, #tpu.memory_space<vmem>>, vector<1x1x2x288xf32>
    %122 = vector.shape_cast %121 : vector<1x1x2x288xf32> to vector<2x288xf32>
    %cst_71 = arith.constant dense<0.000000e+00> : vector<4x288xf32>
    %123 = tpu.matmul %7, %122, %cst_71 {dimension_numbers = #tpu.dot_dimension_numbers<[1], [0], [0], [1], [0, 0, 1, 1], [], []>} : vector<4x2xf32>, vector<2x288xf32>, vector<4x288xf32> -> vector<4x288xf32>
    %124 = arith.addf %119, %123 : vector<4x288xf32>
    %125 = arith.index_cast %c1_i32 : i32 to index
    %c0_72 = arith.constant 0 : index
    %c0_73 = arith.constant 0 : index
    %c36_74 = arith.constant 36 : index
    %126 = vector.load %arg2[%125, %c0_72, %c0_73, %c36_74] : memref<2x1x2x342xf32, #tpu.memory_space<vmem>>, vector<1x1x2x288xf32>
    %127 = vector.shape_cast %126 : vector<1x1x2x288xf32> to vector<2x288xf32>
    %cst_75 = arith.constant dense<0.000000e+00> : vector<4x288xf32>
    %128 = tpu.matmul %8, %127, %cst_75 {dimension_numbers = #tpu.dot_dimension_numbers<[1], [0], [0], [1], [0, 0, 1, 1], [], []>} : vector<4x2xf32>, vector<2x288xf32>, vector<4x288xf32> -> vector<4x288xf32>
    %129 = arith.addf %124, %128 : vector<4x288xf32>
    %130 = arith.index_cast %c1_i32 : i32 to index
    %c0_76 = arith.constant 0 : index
    %c0_77 = arith.constant 0 : index
    %c37_78 = arith.constant 37 : index
    %131 = vector.load %arg2[%130, %c0_76, %c0_77, %c37_78] : memref<2x1x2x342xf32, #tpu.memory_space<vmem>>, vector<1x1x2x288xf32>
    %132 = vector.shape_cast %131 : vector<1x1x2x288xf32> to vector<2x288xf32>
    %cst_79 = arith.constant dense<0.000000e+00> : vector<4x288xf32>
    %133 = tpu.matmul %9, %132, %cst_79 {dimension_numbers = #tpu.dot_dimension_numbers<[1], [0], [0], [1], [0, 0, 1, 1], [], []>} : vector<4x2xf32>, vector<2x288xf32>, vector<4x288xf32> -> vector<4x288xf32>
    %134 = arith.addf %129, %133 : vector<4x288xf32>
    %135 = arith.index_cast %c1_i32 : i32 to index
    %c0_80 = arith.constant 0 : index
    %c0_81 = arith.constant 0 : index
    %c38_82 = arith.constant 38 : index
    %136 = vector.load %arg2[%135, %c0_80, %c0_81, %c38_82] : memref<2x1x2x342xf32, #tpu.memory_space<vmem>>, vector<1x1x2x288xf32>
    %137 = vector.shape_cast %136 : vector<1x1x2x288xf32> to vector<2x288xf32>
    %cst_83 = arith.constant dense<0.000000e+00> : vector<4x288xf32>
    %138 = tpu.matmul %10, %137, %cst_83 {dimension_numbers = #tpu.dot_dimension_numbers<[1], [0], [0], [1], [0, 0, 1, 1], [], []>} : vector<4x2xf32>, vector<2x288xf32>, vector<4x288xf32> -> vector<4x288xf32>
    %139 = arith.addf %134, %138 : vector<4x288xf32>
    %140 = vector.shape_cast %139 : vector<4x288xf32> to vector<4x16x18xf32>
    %141 = vector.extract_strided_slice %140 {offsets = [0, 0, 0], sizes = [4, 16, 16], strides = [1, 1, 1]} : vector<4x16x18xf32> to vector<4x16x16xf32>
    %142 = vector.shape_cast %141 : vector<4x16x16xf32> to vector<4x256xf32>
    %143 = vector.broadcast %12 : vector<4x1xf32> to vector<4x256xf32>
    %144 = arith.addf %142, %143 : vector<4x256xf32>
    %145 = vector.shape_cast %144 : vector<4x256xf32> to vector<1x4x256xf32>
    %cst_84 = arith.constant dense<0.000000e+00> : vector<1xf32>
    %146 = vector.multi_reduction <add>, %145, %cst_84 [1, 2] : vector<1x4x256xf32> to vector<1xf32>
    %147 = vector.shape_cast %146 : vector<1xf32> to vector<1x1x1xf32>
    %148 = vector.extract %147[0, 0, 0] : f32 from vector<1x1x1xf32>
    %cst_85 = arith.constant 9.765625E-4 : f32
    %149 = arith.mulf %148, %cst_85 : f32
    %150 = vector.broadcast %149 : f32 to vector<4x256xf32>
    %151 = arith.subf %144, %150 : vector<4x256xf32>
    %152 = arith.mulf %151, %151 : vector<4x256xf32>
    %153 = vector.shape_cast %152 : vector<4x256xf32> to vector<1x4x256xf32>
    %cst_86 = arith.constant dense<0.000000e+00> : vector<1xf32>
    %154 = vector.multi_reduction <add>, %153, %cst_86 [1, 2] : vector<1x4x256xf32> to vector<1xf32>
    %155 = vector.shape_cast %154 : vector<1xf32> to vector<1x1x1xf32>
    %156 = vector.extract %155[0, 0, 0] : f32 from vector<1x1x1xf32>
    %cst_87 = arith.constant 9.765625E-4 : f32
    %157 = arith.mulf %156, %cst_87 : f32
    %cst_88 = arith.constant 9.99999974E-6 : f32
    %158 = arith.addf %157, %cst_88 : f32
    %159 = math.rsqrt %158 : f32
    %160 = vector.broadcast %159 : f32 to vector<4x256xf32>
    %161 = arith.mulf %151, %160 : vector<4x256xf32>
    %162 = vector.broadcast %14 : vector<4x1xf32> to vector<4x256xf32>
    %163 = arith.mulf %161, %162 : vector<4x256xf32>
    %164 = vector.broadcast %16 : vector<4x1xf32> to vector<4x256xf32>
    %165 = arith.addf %163, %164 : vector<4x256xf32>
    %cst_89 = arith.constant 0.000000e+00 : f32
    %166 = vector.broadcast %cst_89 : f32 to vector<4x256xf32>
    %167 = arith.cmpf ogt, %165, %166 : vector<4x256xf32>
    %cst_90 = arith.constant 2.000000e-01 : f32
    %168 = vector.broadcast %cst_90 : f32 to vector<4x256xf32>
    %169 = arith.mulf %168, %165 : vector<4x256xf32>
    %170 = arith.select %167, %165, %169 : vector<4x256xi1>, vector<4x256xf32>
    %171 = arith.index_cast %c1_i32 : i32 to index
    %c0_91 = arith.constant 0 : index
    %c0_92 = arith.constant 0 : index
    %c0_93 = arith.constant 0 : index
    %172 = vector.load %arg7[%171, %c0_91, %c0_92, %c0_93] : memref<2x1x4x256xf32, #tpu.memory_space<vmem>>, vector<1x1x4x256xf32>
    %173 = vector.shape_cast %172 : vector<1x1x4x256xf32> to vector<4x256xf32>
    %174 = vector.shape_cast %170 : vector<4x256xf32> to vector<1x1x4x256xf32>
    tpu.vector_store %arg7[%171, %c0_91, %c0_92, %c0_93], %174 {strides = array<i32>} : memref<2x1x4x256xf32, #tpu.memory_space<vmem>>, vector<1x1x4x256xf32>,
    %c2_i32 = arith.constant 2 : i32
    return
  }
  func.func @transform_0(%arg0: i32, %arg1: i32) -> (i32, i32, i32, i32) {
    %c0_i32 = arith.constant 0 : i32
    %c0_i32_0 = arith.constant 0 : i32
    %c0_i32_1 = arith.constant 0 : i32
    return %arg1, %arg0, %c0_i32, %c0_i32_0 : i32, i32, i32, i32
  }
  func.func @transform_1(%arg0: i32, %arg1: i32) -> (i32, i32, i32) {
    %c0_i32 = arith.constant 0 : i32
    %c0_i32_0 = arith.constant 0 : i32
    %c0_i32_1 = arith.constant 0 : i32
    return %arg0, %c0_i32, %c0_i32_0 : i32, i32, i32
  }
  func.func @transform_2(%arg0: i32, %arg1: i32) -> (i32, i32, i32) {
    %c0_i32 = arith.constant 0 : i32
    %c0_i32_0 = arith.constant 0 : i32
    %c0_i32_1 = arith.constant 0 : i32
    return %arg0, %c0_i32, %c0_i32_0 : i32, i32, i32
  }
  func.func @transform_3(%arg0: i32, %arg1: i32) -> (i32, i32, i32) {
    %c0_i32 = arith.constant 0 : i32
    %c0_i32_0 = arith.constant 0 : i32
    %c0_i32_1 = arith.constant 0 : i32
    return %arg0, %c0_i32, %c0_i32_0 : i32, i32, i32
  }
  func.func @transform_4(%arg0: i32, %arg1: i32) -> (i32, i32, i32) {
    %c0_i32 = arith.constant 0 : i32
    %c0_i32_0 = arith.constant 0 : i32
    %c0_i32_1 = arith.constant 0 : i32
    return %arg0, %c0_i32, %c0_i32_0 : i32, i32, i32
  }
  func.func @transform_5(%arg0: i32, %arg1: i32) -> (i32, i32, i32, i32) {
    %c0_i32 = arith.constant 0 : i32
    %c0_i32_0 = arith.constant 0 : i32
    %c0_i32_1 = arith.constant 0 : i32
    return %arg1, %arg0, %c0_i32, %c0_i32_0 : i32, i32, i32, i32
  }
}

</mosaic_0001>

<bundles_post_ra>
// kernel: tpu_custom_call.1
= control target key start
LH: loop header
LB: loop body
LE: loop exit
PB: predicated region body
PF: predicated region fallthrough
CT: control target
= control target key end

     0   :  { %10 = vsyncpa [#allocation4], 0  ;;  %s5970_s0 = inlined_call_operand.vmem [shape: f32[2,2,2,342], index: 0, kind: input, shape index: {}]   ;;  %s5971_s1 = inlined_call_operand.vmem [shape: f32[2,4,18], index: 1, kind: input, shape index: {}]   ;;  %s5972_s2 = inlined_call_operand.vmem [shape: f32[2,4,1], index: 2, kind: input, shape index: {}]   ;;  %s5973_s3 = inlined_call_operand.vmem [shape: f32[2,4,1], index: 3, kind: input, shape index: {}]   ;;  %s5974_s4 = inlined_call_operand.vmem [shape: f32[2,4,1], index: 4, kind: input, shape index: {}]   ;;  %s5975_s5 = inlined_call_operand.hbm [shape: f32[2,2,4,256], index: 5, kind: output, shape index: {}]  }
   0x1   :  { %12 = vsyncpa [#allocation4 + $0x1], 0  ;;  %s5191_s18 = smov 0   ;;  %s5193_s19 = smov 0  }
   0x2   :  { %s5195_s20 = smov 0   ;;  %s5197_s21 = smov 0  }
   0x3   :  { %s5199_s22 = smov 0   ;;  %s5201_s23 = smov 0  }
   0x4 LB: > { %s4586_s24 = sadd.s32 4294967295, %s5118_s23   ;;  %s4587_s25 = sadd.s32 4294967294, %s5118_s23   ;;  %s5118_s23 = sphi %s5201_s23, %s18_s23   ;;  %s5114_s22 = sphi %s5199_s22, %s6005_s22   ;;  %s5110_s21 = sphi %s5197_s21, %s6004_s21   ;;  %s5106_s20 = sphi %s5195_s20, %s6003_s20   ;;  %s5102_s19 = sphi %s5193_s19, %s6002_s19   ;;  %s5098_s18 = sphi %s5191_s18, %s6001_s18  }
   0x5   : > { %s30_s26 = sadd.s32 1, %s5114_s22  ;;  %s39_s27 = sadd.s32 1, %s5106_s20 }
   0x6   : > { %p32_p0 = scmp.ge.s32.totalorder %s30_s26, 2  ;;  %p46_p1 = scmp.ne.s32.totalorder %s5106_s20, %s5102_s19 }
   0x7   : > { %p47_p2 = scmp.eq.s32.totalorder %s5118_s23, 0  ;;  %p182_p3 = scmp.eq.s32.totalorder %s4586_s24, 1 }
   0x8   : > { %s6007_s26 = smov (%p32_p0, %s30_s26), 0  ;;  %p187_p6 = scmp.ne.s32.totalorder %s5102_s19, %s5098_s18 }
   0x9   : > { %p48_p4 = por %p47_p2, %p46_p1  ;;  %p5230_p5 = por %p182_p3, %p46_p1 }
   0xa   : > { %s35_s29 = ssub.s32 %s5114_s22, %s6007_s26  ;;  %p188_p8 = scmp.eq.s32.totalorder %s4587_s25, 1 }
   0xb   : > { %p37_p7 = scmp.eq.s32.totalorder %s35_s29, 0  ;;  %p4589_p10 = scmp.ge.s32.totalorder %s5118_s23, 2 }
   0xc   : > { %p5241_p9 = por %p188_p8, %p187_p6 }
   0xd   : > { %s5239_s30 = scalar_select %p37_p7, %s5106_s20, %s39_s27  }
   0xe   : > { %204 = sbr.rel (%p4589_p10) target bundleno = 28 (0x1c), region = 16 }
  0x15   : > { %207 = sbr.rel (!%p48_p4) target bundleno = 28 (0x1c), region = 20  ;;  %s209_s7 = sand.u32 (%p48_p4), 1, %s5106_s20  }
  0x16   : > { %s4909_s8 = smul.u32 (%p48_p4), 6, %s5114_s22 }
  0x17   : > { %s4908_s9 = smul.u32 (%p48_p4), 12, %s209_s7 }
  0x18   : > { %s217_s12 = scalar_lea.vmem (%p48_p4), %s5970_s0, %s4909_s8 }
  0x19   : > { %v233_v0 = vld [vmem:[%s217_s12] sm:$0x3f] (%p48_p4)  ;;  %v235_v1 = vld [vmem:[%s217_s12 + $0xc] sm:$0x3f] (%p48_p4)  ;;  %s211_s13 = scalar_lea.vmem (%p48_p4), [#allocation2], %s4908_s9 }
  0x1a   : > { %234 = vst [vmem:[%s211_s13] sm:$0x3f] (%p48_p4), %v233_v0  ;;  %236 = vst [vmem:[%s211_s13 + $0x6] sm:$0x3f] (%p48_p4), %v235_v1 }
  0x1c PF: > { %p4591_p11 = scmp.ge.s32.totalorder %s5118_s23, 1  ;;  %p290_p12 = scmp.lt.s32.totalorder %s5118_s23, 3 }
  0x1e   : > { %p291_p13 = pnand %p4591_p11, %p290_p12 }
  0x1f   : > { %s5256_s14 = sand.u32 (!%p291_p13), 1, %s5102_s19   ;;  %v371_v2 = vlaneseq (!%p291_p13)  ;;  %v5120_v3 = vmov (!%p291_p13), 1983009808   ;;  %p341_p0 = scmp.lt.s32.totalorder (!%p291_p13), %s5110_s21, 1  ;;  %v5121_v5 = vmov (!%p291_p13), 0.0   ;;  %vm5122_vm0 = vmmov (!%p291_p13), 0  }
  0x20   : > { %294 = sbr.rel (%p291_p13) target bundleno = 1561 (0x619), region = 77  ;;  %v369_v4 = vunpack.c.l.s4 (!%p291_p13), %v5120_v3  ;;  %4754 = vmatprep.subr.mxu1 (!%p291_p13), %v5121_v5  ;;  %466 = vmatprep.mubr.f32.mxu0 (!%p291_p13), %v5121_v5  ;;  %s5123_s7 = smov (!%p291_p13), 127   ;;  %vm395_vm1 = vcmask (!%p291_p13), 1041408   ;;  %vm389_vm2 = vcmask (!%p291_p13), 1039360   ;;  %vm392_vm3 = vcmask (!%p291_p13), 15360  }
  0x21   : > { %s4910_s15 = smul.u32 (!%p291_p13), 12, %s5256_s14  ;;  %v5262_v6 = vshrl.u32 (!%p291_p13), %v371_v2, 7  ;;  %4756 = vmatprep.mubr.msk.f32.mxu1 (!%p291_p13), %vm5122_vm0, %v5121_v5  ;;  %s5124_s8 = smov (!%p291_p13), 126   ;;  %vm718_vm4 = vcmask (!%p291_p13), 1031168   ;;  %vm899_vm5 = vcmask (!%p291_p13), 900096   ;;  %vm1080_vm6 = vcmask (!%p291_p13), 891904  }
  0x22   : > { %v370_v7 = vunpack.c.0.s8 (!%p291_p13), %v369_v4  ;;  %s5125_s9 = smov (!%p291_p13), 124   ;;  %s5126_s10 = smov (!%p291_p13), 110   ;;  %vm1261_vm7 = vcmask (!%p291_p13), 883712   ;;  %vm1442_vm8 = vcmask (!%p291_p13), 752640   ;;  %vm1623_vm9 = vcmask (!%p291_p13), 744448  }
  0x23   : > { %s5266_s16 = scalar_lea.vmem (!%p291_p13), [#allocation2], %s4910_s15  ;;  %s5127_s11 = smov (!%p291_p13), 122   ;;  %vm1804_vm10 = vcmask (!%p291_p13), 736256   ;;  %vm2008_vm11 = vcmask (!%p291_p13), 31744   ;;  %vm2342_vm12 = vcmask (!%p291_p13), 130048   ;;  %vm2344_vm13 = vcmask (!%p291_p13), 261120  }
  0x24   : > { %v362_v8 = vld [vmem:[%s5266_s16] sm:$0x3f] (!%p291_p13)  ;;  %v5271_v9 = vsub.s32 (!%p291_p13), %v370_v7, %v5262_v6  ;;  %s5128_s12 = smov (!%p291_p13), 109   ;;  %s5129_s13 = smov (!%p291_p13), 120   ;;  %v4650_v50 = vld [vmem:[%s5266_s16 + $0x6] sm:$0x3f] (!%p291_p13) }
  0x25   : > { %v367_v11 = vcombine.high (!%p291_p13), %v362_v8, %v362_v8  ;;  %v692_v12 = vld [vmem:[%s5266_s16] sm:$0x3f] (!%p291_p13)  ;;  %s5130_s15 = smov (!%p291_p13), 108   ;;  %s5132_s25 = smov (!%p291_p13), 92   ;;  %v2437_v51 = vcombine.high (!%p291_p13), %v4650_v50, %v4650_v50  ;;  %v4661_v52 = vld [vmem:[%s5266_s16 + $0x6] sm:$0x3f] (!%p291_p13) }
  0x26   : > { %v5276_v10 = vrot.slane (!%p291_p13), %v362_v8, %v5271_v9  ;;  %v696_v14 = vcombine.high (!%p291_p13), %v692_v12, %v692_v12  ;;  %v703_v17 = vrot.slane (!%p291_p13), %v692_v12, %v5271_v9  ;;  %v873_v20 = vld [vmem:[%s5266_s16] sm:$0x3f] (!%p291_p13)  ;;  %s5133_s27 = smov (!%p291_p13), 116   ;;  %v5350_v53 = vrot.slane (!%p291_p13), %v4650_v50, %v5271_v9  ;;  %v4667_v59 = vld [vmem:[%s5266_s16 + $0x6] sm:$0x3f] (!%p291_p13) }
  0x27   : > { %s342_s17 = scalar_select %p341_p0, %s5110_s21, 1  ;;  %v5294_v16 = vrot.slane %v367_v11, %v5271_v9  ;;  %v877_v21 = vcombine.high %v873_v20, %v873_v20  ;;  %v884_v22 = vrot.slane %v873_v20, %v5271_v9  ;;  %v1054_v25 = vld [vmem:[%s5266_s16] sm:$0x3f]  ;;  %v5355_v54 = vrot.slane %v2437_v51, %v5271_v9  ;;  %v4673_v61 = vld [vmem:[%s5266_s16 + $0x6] sm:$0x3f] }
  0x28   : > { %383 = vrot.lane.b32.xlu1 %v5276_v10, %s5123_s7  ;;  %v5287_v13 = vcombine.high %v5276_v10, %v5276_v10  ;;  %v710_v18 = vrot.slane %v696_v14, %v5271_v9  ;;  %v711_v19 = vcombine.high %v703_v17, %v703_v17  ;;  %v1058_v26 = vcombine.high %v1054_v25, %v1054_v25  ;;  %v1235_v30 = vld [vmem:[%s5266_s16] sm:$0x3f]  ;;  %v4679_v7 = vld [vmem:[%s5266_s16 + $0x6] sm:$0x3f] }
  0x29   : > { %s5273_s24 = sshll.u32 %s342_s17, 2  ;;  %v891_v23 = vrot.slane %v877_v21, %v5271_v9  ;;  %v892_v24 = vcombine.high %v884_v22, %v884_v22  ;;  %v1065_v27 = vrot.slane %v1054_v25, %v5271_v9  ;;  %v1239_v31 = vcombine.high %v1235_v30, %v1235_v30  ;;  %v1416_v35 = vld [vmem:[%s5266_s16] sm:$0x3f]  ;;  %s5131_s17 = smov 118   ;;  %v4685_v11 = vld [vmem:[%s5266_s16 + $0x6] sm:$0x3f] }
  0x2a   : > { %s344_s29 = scalar_lea.vmem %s5971_s1, %s5273_s24  ;;  %385 = vrot.lane.b32.xlu0 %v5287_v13, %s5123_s7  ;;  %v1072_v28 = vrot.slane %v1058_v26, %v5271_v9  ;;  %v1246_v32 = vrot.slane %v1235_v30, %v5271_v9  ;;  %v1420_v36 = vcombine.high %v1416_v35, %v1416_v35  ;;  %v1427_v37 = vrot.slane %v1416_v35, %v5271_v9  ;;  %v1597_v40 = vld [vmem:[%s5266_s16] sm:$0x3f] }
  0x2b   : > { %v5289_v15 = vld [vmem:[%s344_s29] sm:$0xf]  ;;  %v1073_v29 = vcombine.high %v1065_v27, %v1065_v27  ;;  %v1253_v33 = vrot.slane %v1239_v31, %v5271_v9  ;;  %v1601_v41 = vcombine.high %v1597_v40, %v1597_v40  ;;  %v1608_v42 = vrot.slane %v1597_v40, %v5271_v9  ;;  %s5134_s29 = smov 91  }
  0x2c   : > { %364 = vrot.lane.b32.xlu1 %v5289_v15, %s5124_s8  ;;  %v1254_v34 = vcombine.high %v1246_v32, %v1246_v32  ;;  %v1434_v38 = vrot.slane %v1420_v36, %v5271_v9  ;;  %v1435_v39 = vcombine.high %v1427_v37, %v1427_v37  ;;  %v1778_v45 = vld [vmem:[%s5266_s16] sm:$0x3f]  ;;  %v2764_v55 = vrot.slane %v4661_v52, %v5271_v9 }
  0x2d   : > { %v1615_v43 = vrot.slane %v1601_v41, %v5271_v9  ;;  %v1616_v44 = vcombine.high %v1608_v42, %v1608_v42  ;;  %v1782_v46 = vcombine.high %v1778_v45, %v1778_v45  ;;  %v1789_v47 = vrot.slane %v1778_v45, %v5271_v9 }
  0x2e   : > { %387 = vrot.lane.b32.xlu0 %v5294_v16, %s5123_s7  ;;  %v5361_v56 = vcombine.high %v5350_v53, %v5350_v53  ;;  %v2772_v57 = vcombine.high %v2764_v55, %v2764_v55  ;;  %v2757_v58 = vcombine.high %v4661_v52, %v4661_v52  ;;  %v2933_v60 = vcombine.high %v4667_v59, %v4667_v59 }
  0x2f   : > { %v1796_v48 = vrot.slane %v1782_v46, %v5271_v9  ;;  %v1797_v49 = vcombine.high %v1789_v47, %v1789_v47  ;;  %v2940_v63 = vrot.slane %v4667_v59, %v5271_v9  ;;  %v3116_v1 = vrot.slane %v4673_v61, %v5271_v9 }
  0x30   : > { %716 = vrot.lane.b32.xlu1 %v710_v18, %s5124_s8  ;;  %v2771_v62 = vrot.slane %v2757_v58, %v5271_v9  ;;  %v2947_v0 = vrot.slane %v2933_v60, %v5271_v9  ;;  %v3109_v4 = vcombine.high %v4673_v61, %v4673_v61  ;;  %v3285_v8 = vcombine.high %v4679_v7, %v4679_v7 }
  0x31   : > { %v2948_v2 = vcombine.high %v2940_v63, %v2940_v63  ;;  %v3124_v3 = vcombine.high %v3116_v1, %v3116_v1  ;;  %v3292_v14 = vrot.slane %v4679_v7, %v5271_v9  ;;  %v3468_v18 = vrot.slane %v4685_v11, %v5271_v9 }
  0x32   : > { %714 = vrot.lane.b32.xlu0 %v711_v19, %s5124_s8  ;;  %v3123_v12 = vrot.slane %v3109_v4, %v5271_v9  ;;  %v3461_v21 = vcombine.high %v4685_v11, %v4685_v11  ;;  %vm2346_vm14 = vcmask 392192   ;;  %vm2348_vm15 = vcmask 523264  }
  0x33   : > { %v3300_v19 = vcombine.high %v3292_v14, %v3292_v14  ;;  %v3476_v20 = vcombine.high %v3468_v18, %v3468_v18 }
  0x34   : > { %693 = vrot.lane.b32.xlu1 %v5289_v15, %s5125_s9  ;;  %s5984_s9 = smov 114   ;;  %v3475_v25 = vrot.slane %v3461_v21, %v5271_v9 }
  0x36   : > { %712 = vrot.lane.b32.xlu0 %v703_v17, %s5124_s8  ;;  %v3299_v17 = vrot.slane %v3285_v8, %v5271_v9 }
  0x38   : > { %897 = vrot.lane.b32.xlu1 %v891_v23, %s5126_s10 }
  0x3a   : > { %895 = vrot.lane.b32.xlu0 %v892_v24, %s5126_s10  ;;  %v4697_v24 = vld [vmem:[%s5266_s16 + $0x6] sm:$0x3f] }
  0x3b   : > { %v3813_v31 = vcombine.high %v4697_v24, %v4697_v24 }
  0x3c   : > { %874 = vrot.lane.b32.xlu1 %v5289_v15, %s5127_s11  ;;  %s5136_s11 = smov 90  }
  0x3e   : > { %893 = vrot.lane.b32.xlu0 %v884_v22, %s5126_s10  ;;  %v4691_v22 = vld [vmem:[%s5266_s16 + $0x6] sm:$0x3f]  ;;  %s5138_s16 = smov 4  }
  0x3f   : > { %v3637_v23 = vcombine.high %v4691_v22, %v4691_v22  ;;  %v3644_v26 = vrot.slane %v4691_v22, %v5271_v9 }
  0x40   : > { %1078 = vrot.lane.b32.xlu1 %v1072_v28, %s5128_s12  ;;  %v3820_v28 = vrot.slane %v4697_v24, %v5271_v9 }
  0x42   : > { %1076 = vrot.lane.b32.xlu0 %v1073_v29, %s5128_s12  ;;  %v3652_v29 = vcombine.high %v3644_v26, %v3644_v26  ;;  %v3828_v30 = vcombine.high %v3820_v28, %v3820_v28 }
  0x44   : > { %1055 = vrot.lane.b32.xlu1 %v5289_v15, %s5129_s13  ;;  %s5137_s13 = smov 112  }
  0x46   : > { %1074 = vrot.lane.b32.xlu0 %v1065_v27, %s5128_s12  ;;  %v3651_v27 = vrot.slane %v3637_v23, %v5271_v9 }
  0x48   : > { %1259 = vrot.lane.b32.xlu1 %v1253_v33, %s5130_s15 }
  0x4a   : > { %1257 = vrot.lane.b32.xlu0 %v1254_v34, %s5130_s15 }
  0x4c   : > { %1236 = vrot.lane.b32.xlu1 %v5289_v15, %s5131_s17  ;;  %s5978_s17 = smov 20  }
  0x4e   : > { %1255 = vrot.lane.b32.xlu0 %v1246_v32, %s5130_s15  ;;  %v3827_v32 = vrot.slane %v3813_v31, %v5271_v9 }
  0x50   : > { %1440 = vrot.lane.b32.xlu1 %v1434_v38, %s5132_s25 }
  0x52   : > { %1438 = vrot.lane.b32.xlu0 %v1435_v39, %s5132_s25 }
  0x54   : > { %1417 = vrot.lane.b32.xlu1 %v5289_v15, %s5133_s27  ;;  %s5980_s27 = smov 94  }
  0x56   : > { %1436 = vrot.lane.b32.xlu0 %v1427_v37, %s5132_s25 }
  0x58   : > { %1621 = vrot.lane.b32.xlu1 %v1615_v43, %s5134_s29 }
  0x5a   : > { %1619 = vrot.lane.b32.xlu0 %v1616_v44, %s5134_s29 }
  0x5c   : > { %1598 = vrot.lane.b32.xlu1 %v5289_v15, %s5984_s9 }
  0x5e   : > { %1617 = vrot.lane.b32.xlu0 %v1608_v42, %s5134_s29 }
  0x60   : > { %1802 = vrot.lane.b32.xlu1 %v1796_v48, %s5136_s11 }
  0x62   : > { %1800 = vrot.lane.b32.xlu0 %v1797_v49, %s5136_s11 }
  0x64   : > { %1779 = vrot.lane.b32.xlu1 %v5289_v15, %s5137_s13 }
  0x66   : > { %1798 = vrot.lane.b32.xlu0 %v1789_v47, %s5136_s11 }
  0x68   : > { %2457 = vrot.lane.b32.xlu1 %v5355_v54, %s5123_s7 }
  0x6a   : > { %2455 = vrot.lane.b32.xlu0 %v5361_v56, %s5123_s7 }
  0x6c   : > { %2775 = vrot.lane.b32.xlu1 %v2772_v57, %s5124_s8 }
  0x6e   : > { %2453 = vrot.lane.b32.xlu0 %v5350_v53, %s5123_s7  ;;  %s5139_s7 = smov 2  }
  0x70   : > { %2773 = vrot.lane.b32.xlu1 %v2764_v55, %s5124_s8 }
  0x72   : > { %2777 = vrot.lane.b32.xlu0 %v2771_v62, %s5124_s8  ;;  %s5979_s8 = smov 74  }
  0x74   : > { %2953 = vrot.lane.b32.xlu1 %v2947_v0, %s5126_s10 }
  0x76   : > { %2951 = vrot.lane.b32.xlu0 %v2948_v2, %s5126_s10 }
  0x78   : > { %3127 = vrot.lane.b32.xlu1 %v3124_v3, %s5128_s12 }
  0x7a   : > { %2949 = vrot.lane.b32.xlu0 %v2940_v63, %s5126_s10 }
  0x7c   : > { %3125 = vrot.lane.b32.xlu1 %v3116_v1, %s5128_s12 }
  0x7e   : > { %3129 = vrot.lane.b32.xlu0 %v3123_v12, %s5128_s12  ;;  %s5976_s12 = smov 56  }
  0x80   : > { %3305 = vrot.lane.b32.xlu1 %v3299_v17, %s5130_s15 }
  0x82   : > { %3303 = vrot.lane.b32.xlu0 %v3300_v19, %s5130_s15 }
  0x84   : > { %3479 = vrot.lane.b32.xlu1 %v3476_v20, %s5132_s25 }
  0x86   : > { %3301 = vrot.lane.b32.xlu0 %v3292_v14, %s5130_s15  ;;  %s5977_s15 = smov 38  }
  0x88   : > { %3477 = vrot.lane.b32.xlu1 %v3468_v18, %s5132_s25 }
  0x8a   : > { %3481 = vrot.lane.b32.xlu0 %v3475_v25, %s5132_s25 }
  0x8c   : > { %3657 = vrot.lane.b32.xlu1 %v3651_v27, %s5134_s29 }
  0x8e   : > { %3655 = vrot.lane.b32.xlu0 %v3652_v29, %s5134_s29 }
  0x90   : > { %3831 = vrot.lane.b32.xlu1 %v3828_v30, %s5136_s11 }
  0x92   : > { %3653 = vrot.lane.b32.xlu0 %v3644_v26, %s5134_s29  ;;  %s5146_s29 = smov 58  }
  0x94   : > { %3829 = vrot.lane.b32.xlu1 %v3820_v28, %s5136_s11 }
  0x96   : > { %3833 = vrot.lane.b32.xlu0 %v3827_v32, %s5136_s11  ;;  %s5147_s11 = smov 76  }
  0x9a   : > { %v384_v33 = vpop.permute.xlu1 %383 }
  0x9c   : > { %v386_v34 = vpop.permute.xlu0 %385 }
  0x9d   : > { %v390_v38 = vsel %vm389_vm2, %v384_v33, %v386_v34 }
  0x9e   : > { %v5409_v35 = vpop.permute.xlu1 %364 }
  0xa0   : > { %v388_v36 = vpop.permute.xlu0 %387 }
  0xa1   : > { %4755 = vmatpush3.msk.msra.mxu1 %vm395_vm1, %v388_v36  ;;  %v391_v37 = vsel %vm389_vm2, %v386_v34, %v388_v36 }
  0xa2   : > { %4597 = vmatprep.subr.msk.mxu0 %vm395_vm1, %v391_v37  ;;  %4757 = vmatmul.mubr.msk.f32.vlgmr.msra.gmra.mrb[0].mxu1 %vm392_vm3, %v5409_v35  ;;  %v717_v39 = vpop.permute.xlu1 %716 }
  0xa3   : > { %4759 = vmatprep.subr.mxu1 %v5121_v5  ;;  %4598 = vmatpush1.msk.msra.mxu0 %vm395_vm1, %v390_v38 }
  0xa4   : > { %4760 = vmatpush3.msk.msra.mxu1 %vm395_vm1, %v5294_v16  ;;  %4599 = vmatmul.mubr.msk.f32.vlgmr.msra.gmra.mrb[0].mxu0 %vm392_vm3, %v5409_v35  ;;  %v715_v40 = vpop.permute.xlu0 %714 }
  0xa5   : > { %4602 = vmatprep.subr.msk.mxu0 %vm395_vm1, %v5287_v13  ;;  %4761 = vmatprep.mubr.msk.f32.mxu1 %vm5122_vm0, %v5121_v5  ;;  %v720_v41 = vsel %vm718_vm4, %v715_v40, %v717_v39 }
  0xa6   : > { %4603 = vmatpush1.msk.msra.mxu0 %vm395_vm1, %v5276_v10  ;;  %4764 = vmatprep.subr.mxu1 %v5121_v5  ;;  %v5431_v42 = vpop.permute.xlu1 %693 }
  0xa7   : > { %615 = vmatprep.mubr.f32.mxu0 %v5121_v5  ;;  %4607 = vmatprep.subr.msk.mxu0 %vm395_vm1, %v720_v41 }
  0xa8   : > { %v713_v16 = vpop.permute.xlu0 %712 }
  0xa9   : > { %v719_v43 = vsel %vm718_vm4, %v713_v16, %v715_v40 }
  0xaa   : > { %4762 = vmatmul.mubr.msk.f32.vlgmr.msra.gmra.mrb[0].mxu1 %vm392_vm3, %v5289_v15  ;;  %v898_v13 = vpop.permute.xlu1 %897 }
  0xab   : > { %4765 = vmatpush3.msk.msra.mxu1 %vm395_vm1, %v717_v39  ;;  %4766 = vmatprep.mubr.msk.f32.mxu1 %vm5122_vm0, %v5121_v5 }
  0xac   : > { %4604 = vmatmul.mubr.msk.f32.vlgmr.msra.gmra.mrb[0].mxu0 %vm392_vm3, %v5289_v15  ;;  %v896_v10 = vpop.permute.xlu0 %895  ;;  %4769 = vmatprep.subr.mxu1 %v5121_v5 }
  0xad   : > { %4608 = vmatpush1.msk.msra.mxu0 %vm395_vm1, %v719_v43  ;;  %793 = vmatprep.mubr.f32.mxu0 %v5121_v5  ;;  %v901_v44 = vsel %vm899_vm5, %v896_v10, %v898_v13 }
  0xae   : > { %4612 = vmatprep.subr.msk.mxu0 %vm395_vm1, %v901_v44  ;;  %v5448_v45 = vpop.permute.xlu1 %874 }
  0xb0   : > { %v894_v46 = vpop.permute.xlu0 %893 }
  0xb1   : > { %v900_v47 = vsel %vm899_vm5, %v894_v46, %v896_v10 }
  0xb2   : > { %4767 = vmatmul.mubr.msk.f32.vlgmr.msra.gmra.mrb[0].mxu1 %vm392_vm3, %v5431_v42  ;;  %v1079_v48 = vpop.permute.xlu1 %1078 }
  0xb3   : > { %4770 = vmatpush3.msk.msra.mxu1 %vm395_vm1, %v898_v13  ;;  %4771 = vmatprep.mubr.msk.f32.mxu1 %vm5122_vm0, %v5121_v5 }
  0xb4   : > { %4609 = vmatmul.mubr.msk.f32.vlgmr.msra.gmra.mrb[0].mxu0 %vm392_vm3, %v5431_v42  ;;  %v1077_v49 = vpop.permute.xlu0 %1076  ;;  %4774 = vmatprep.subr.mxu1 %v5121_v5 }
  0xb5   : > { %4613 = vmatpush1.msk.msra.mxu0 %vm395_vm1, %v900_v47  ;;  %974 = vmatprep.mubr.f32.mxu0 %v5121_v5  ;;  %v1082_v50 = vsel %vm1080_vm6, %v1077_v49, %v1079_v48 }
  0xb6   : > { %4617 = vmatprep.subr.msk.mxu0 %vm395_vm1, %v1082_v50  ;;  %v5463_v51 = vpop.permute.xlu1 %1055 }
  0xb8   : > { %v1075_v52 = vpop.permute.xlu0 %1074 }
  0xb9   : > { %v1081_v55 = vsel %vm1080_vm6, %v1075_v52, %v1077_v49 }
  0xba   : > { %4772 = vmatmul.mubr.msk.f32.vlgmr.msra.gmra.mrb[0].mxu1 %vm392_vm3, %v5448_v45  ;;  %v1260_v57 = vpop.permute.xlu1 %1259 }
  0xbb   : > { %4775 = vmatpush3.msk.msra.mxu1 %vm395_vm1, %v1079_v48  ;;  %4776 = vmatprep.mubr.msk.f32.mxu1 %vm5122_vm0, %v5121_v5 }
  0xbc   : > { %4614 = vmatmul.mubr.msk.f32.vlgmr.msra.gmra.mrb[0].mxu0 %vm392_vm3, %v5448_v45  ;;  %v1258_v58 = vpop.permute.xlu0 %1257  ;;  %4779 = vmatprep.subr.mxu1 %v5121_v5 }
  0xbd   : > { %4618 = vmatpush1.msk.msra.mxu0 %vm395_vm1, %v1081_v55  ;;  %1155 = vmatprep.mubr.f32.mxu0 %v5121_v5  ;;  %v1263_v59 = vsel %vm1261_vm7, %v1258_v58, %v1260_v57 }
  0xbe   : > { %4622 = vmatprep.subr.msk.mxu0 %vm395_vm1, %v1263_v59  ;;  %v5478_v60 = vpop.permute.xlu1 %1236 }
  0xc0   : > { %v1256_v61 = vpop.permute.xlu0 %1255 }
  0xc1   : > { %v1262_v62 = vsel %vm1261_vm7, %v1256_v61, %v1258_v58 }
  0xc2   : > { %4777 = vmatmul.mubr.msk.f32.vlgmr.msra.gmra.mrb[0].mxu1 %vm392_vm3, %v5463_v51  ;;  %v1441_v63 = vpop.permute.xlu1 %1440 }
  0xc3   : > { %4780 = vmatpush3.msk.msra.mxu1 %vm395_vm1, %v1260_v57  ;;  %4781 = vmatprep.mubr.msk.f32.mxu1 %vm5122_vm0, %v5121_v5 }
  0xc4   : > { %4619 = vmatmul.mubr.msk.f32.vlgmr.msra.gmra.mrb[0].mxu0 %vm392_vm3, %v5463_v51  ;;  %v1439_v0 = vpop.permute.xlu0 %1438  ;;  %4784 = vmatprep.subr.mxu1 %v5121_v5 }
  0xc5   : > { %4623 = vmatpush1.msk.msra.mxu0 %vm395_vm1, %v1262_v62  ;;  %1336 = vmatprep.mubr.f32.mxu0 %v5121_v5  ;;  %v1444_v1 = vsel %vm1442_vm8, %v1439_v0, %v1441_v63 }
  0xc6   : > { %4627 = vmatprep.subr.msk.mxu0 %vm395_vm1, %v1444_v1  ;;  %v5493_v2 = vpop.permute.xlu1 %1417 }
  0xc8   : > { %v1437_v3 = vpop.permute.xlu0 %1436 }
  0xc9   : > { %v1443_v4 = vsel %vm1442_vm8, %v1437_v3, %v1439_v0  ;;  %v5140_v0 = vmov 0  }
  0xca   : > { %4782 = vmatmul.mubr.msk.f32.vlgmr.msra.gmra.mrb[0].mxu1 %vm392_vm3, %v5478_v60  ;;  %v1622_v7 = vpop.permute.xlu1 %1621  ;;  %5018 = vset.pattern.permute.xlu1 %v5140_v0 }
  0xcb   : > { %4785 = vmatpush3.msk.msra.mxu1 %vm395_vm1, %v1441_v63  ;;  %4786 = vmatprep.mubr.msk.f32.mxu1 %vm5122_vm0, %v5121_v5 }
  0xcc   : > { %4624 = vmatmul.mubr.msk.f32.vlgmr.msra.gmra.mrb[0].mxu0 %vm392_vm3, %v5478_v60  ;;  %v1620_v8 = vpop.permute.xlu0 %1619  ;;  %4789 = vmatprep.subr.mxu1 %v5121_v5 }
  0xcd   : > { %4628 = vmatpush1.msk.msra.mxu0 %vm395_vm1, %v1443_v4  ;;  %1517 = vmatprep.mubr.f32.mxu0 %v5121_v5  ;;  %v1625_v11 = vsel %vm1623_vm9, %v1620_v8, %v1622_v7 }
  0xce   : > { %4632 = vmatprep.subr.msk.mxu0 %vm395_vm1, %v1625_v11  ;;  %v5508_v12 = vpop.permute.xlu1 %1598  ;;  %5019 = vset.pattern.permute.xlu0 %v5140_v0 }
  0xd0   : > { %v1618_v14 = vpop.permute.xlu0 %1617 }
  0xd1   : > { %v1624_v17 = vsel %vm1623_vm9, %v1618_v14, %v1620_v8 }
  0xd2   : > { %4787 = vmatmul.mubr.msk.f32.vlgmr.msra.gmra.mrb[0].mxu1 %vm392_vm3, %v5493_v2  ;;  %v1803_v18 = vpop.permute.xlu1 %1802 }
  0xd3   : > { %4790 = vmatpush3.msk.msra.mxu1 %vm395_vm1, %v1622_v7  ;;  %4791 = vmatprep.mubr.msk.f32.mxu1 %vm5122_vm0, %v5121_v5 }
  0xd4   : > { %4629 = vmatmul.mubr.msk.f32.vlgmr.msra.gmra.mrb[0].mxu0 %vm392_vm3, %v5493_v2  ;;  %v1801_v19 = vpop.permute.xlu0 %1800  ;;  %4794 = vmatprep.subr.mxu1 %v5121_v5 }
  0xd5   : > { %4633 = vmatpush1.msk.msra.mxu0 %vm395_vm1, %v1624_v17  ;;  %1698 = vmatprep.mubr.f32.mxu0 %v5121_v5  ;;  %v1806_v20 = vsel %vm1804_vm10, %v1801_v19, %v1803_v18 }
  0xd6   : > { %4637 = vmatprep.subr.msk.mxu0 %vm395_vm1, %v1806_v20  ;;  %v5523_v21 = vpop.permute.xlu1 %1779 }
  0xd8   : > { %v1799_v22 = vpop.permute.xlu0 %1798 }
  0xd9   : > { %v1805_v23 = vsel %vm1804_vm10, %v1799_v22, %v1801_v19 }
  0xda   : > { %4792 = vmatmul.mubr.msk.f32.vlgmr.msra.gmra.mrb[0].mxu1 %vm392_vm3, %v5508_v12  ;;  %v2458_v24 = vpop.permute.xlu1 %2457 }
  0xdb   : > { %4795 = vmatpush3.msk.msra.mxu1 %vm395_vm1, %v1803_v18  ;;  %4796 = vmatprep.mubr.msk.f32.mxu1 %vm5122_vm0, %v5121_v5 }
  0xdc   : > { %4634 = vmatmul.mubr.msk.f32.vlgmr.msra.gmra.mrb[0].mxu0 %vm392_vm3, %v5508_v12  ;;  %v2456_v25 = vpop.permute.xlu0 %2455  ;;  %4799 = vmatprep.subr.mxu1 %v5121_v5 }
  0xdd   : > { %4638 = vmatpush1.msk.msra.mxu0 %vm395_vm1, %v1805_v23  ;;  %1879 = vmatprep.mubr.f32.mxu0 %v5121_v5  ;;  %v2460_v26 = vsel %vm389_vm2, %v2456_v25, %v2458_v24 }
  0xde   : > { %4651 = vmatprep.subr.msk.mxu0 %vm395_vm1, %v2460_v26  ;;  %v2776_v29 = vpop.permute.xlu1 %2775 }
  0xe0   : > { %v2454_v27 = vpop.permute.xlu0 %2453 }
  0xe1   : > { %v2459_v28 = vsel %vm389_vm2, %v2454_v27, %v2456_v25  ;;  %vm2354_vm2 = vcmask 916480  }
  0xe2   : > { %4797 = vmatmul.mubr.msk.f32.vlgmr.msra.gmra.mrb[0].mxu1 %vm392_vm3, %v5523_v21  ;;  %v2774_v32 = vpop.permute.xlu1 %2773 }
  0xe3   : > { %4800 = vmatpush3.msk.msra.mxu1 %vm395_vm1, %v2458_v24  ;;  %4801 = vmatprep.mubr.msk.f32.mxu1 %vm5122_vm0, %v5121_v5  ;;  %v2779_v33 = vsel %vm718_vm4, %v2774_v32, %v2776_v29 }
  0xe4   : > { %4639 = vmatmul.mubr.msk.f32.vlgmr.msra.gmra.mrb[0].mxu0 %vm392_vm3, %v5523_v21  ;;  %4804 = vmatprep.subr.mxu1 %v5121_v5  ;;  %v2778_v30 = vpop.permute.xlu0 %2777 }
  0xe5   : > { %4652 = vmatpush1.msk.msra.mxu0 %vm395_vm1, %v2459_v28  ;;  %2531 = vmatprep.mubr.f32.mxu0 %v5121_v5  ;;  %v2780_v31 = vsel %vm718_vm4, %v2776_v29, %v2778_v30  ;;  %vm2370_vm4 = vcmask 1043456  }
  0xe6   : > { %4802 = vmatmul.mubr.msk.f32.vlgmr.msra.gmra.mrb[2].mxu1 %vm392_vm3, %v5409_v35  ;;  %4656 = vmatprep.subr.msk.mxu0 %vm395_vm1, %v5361_v56 }
  0xe7   : > { %4805 = vmatpush3.msk.msra.mxu1 %vm395_vm1, %v5355_v54  ;;  %4806 = vmatprep.mubr.msk.f32.mxu1 %vm5122_vm0, %v5121_v5  ;;  %v2954_v54 = vpop.permute.xlu1 %2953 }
  0xe8   : > { %4653 = vmatmul.mubr.msk.f32.vlgmr.msra.gmra.mrb[2].mxu0 %vm392_vm3, %v5409_v35  ;;  %4809 = vmatprep.subr.mxu1 %v5121_v5  ;;  %v2952_v56 = vpop.permute.xlu0 %2951 }
  0xe9   : > { %4657 = vmatpush1.msk.msra.mxu0 %vm395_vm1, %v5350_v53  ;;  %2678 = vmatprep.mubr.f32.mxu0 %v5121_v5  ;;  %v2956_v34 = vsel %vm899_vm5, %v2952_v56, %v2954_v54 }
  0xea   : > { %4662 = vmatprep.subr.msk.mxu0 %vm395_vm1, %v2780_v31 }
  0xeb   : > { %v3128_v35 = vpop.permute.xlu1 %3127 }
  0xec   : > { %v2950_v53 = vpop.permute.xlu0 %2949 }
  0xed   : > { %v2955_v37 = vsel %vm899_vm5, %v2950_v53, %v2952_v56 }
  0xee   : > { %4807 = vmatmul.mubr.msk.f32.vlgmr.msra.gmra.mrb[2].mxu1 %vm392_vm3, %v5289_v15 }
  0xef   : > { %4810 = vmatpush3.msk.msra.mxu1 %vm395_vm1, %v2778_v30  ;;  %4811 = vmatprep.mubr.msk.f32.mxu1 %vm5122_vm0, %v5121_v5  ;;  %v3126_v38 = vpop.permute.xlu1 %3125 }
  0xf0   : > { %4658 = vmatmul.mubr.msk.f32.vlgmr.msra.gmra.mrb[2].mxu0 %vm392_vm3, %v5289_v15  ;;  %4814 = vmatprep.subr.mxu1 %v5121_v5  ;;  %v3130_v36 = vpop.permute.xlu0 %3129  ;;  %v3131_v41 = vsel %vm1080_vm6, %v3126_v38, %v3128_v35 }
  0xf1   : > { %4663 = vmatpush1.msk.msra.mxu0 %vm395_vm1, %v2779_v33  ;;  %2851 = vmatprep.mubr.f32.mxu0 %v5121_v5  ;;  %v3132_v15 = vsel %vm1080_vm6, %v3128_v35, %v3130_v36 }
  0xf2   : > { %4668 = vmatprep.subr.msk.mxu0 %vm395_vm1, %v2956_v34 }
  0xf3   : > { %v3306_v40 = vpop.permute.xlu1 %3305 }
  0xf4   : > { %v3304_v39 = vpop.permute.xlu0 %3303 }
  0xf6   : > { %4812 = vmatmul.mubr.msk.f32.vlgmr.msra.gmra.mrb[2].mxu1 %vm392_vm3, %v5431_v42 }
  0xf7   : > { %4815 = vmatpush3.msk.msra.mxu1 %vm395_vm1, %v2954_v54  ;;  %4816 = vmatprep.mubr.msk.f32.mxu1 %vm5122_vm0, %v5121_v5  ;;  %v3480_v43 = vpop.permute.xlu1 %3479 }
  0xf8   : > { %4664 = vmatmul.mubr.msk.f32.vlgmr.msra.gmra.mrb[2].mxu0 %vm392_vm3, %v5431_v42  ;;  %4819 = vmatprep.subr.mxu1 %v5121_v5  ;;  %v3308_v42 = vsel %vm1261_vm7, %v3304_v39, %v3306_v40  ;;  %v3302_v16 = vpop.permute.xlu0 %3301 }
  0xf9   : > { %4669 = vmatpush1.msk.msra.mxu0 %vm395_vm1, %v2955_v37  ;;  %3027 = vmatprep.mubr.f32.mxu0 %v5121_v5  ;;  %v3307_v10 = vsel %vm1261_vm7, %v3302_v16, %v3304_v39 }
  0xfa   : > { %4674 = vmatprep.subr.msk.mxu0 %vm395_vm1, %v3132_v15 }
  0xfc   : > { %v3482_v13 = vpop.permute.xlu0 %3481 }
  0xfd   : > { %v3484_v44 = vsel %vm1442_vm8, %v3480_v43, %v3482_v13 }
  0xfe   : > { %4817 = vmatmul.mubr.msk.f32.vlgmr.msra.gmra.mrb[2].mxu1 %vm392_vm3, %v5448_v45 }
  0xff   : > { %4820 = vmatpush3.msk.msra.mxu1 %vm395_vm1, %v3130_v36  ;;  %4821 = vmatprep.mubr.msk.f32.mxu1 %vm5122_vm0, %v5121_v5 }
 0x100   : > { %4670 = vmatmul.mubr.msk.f32.vlgmr.msra.gmra.mrb[2].mxu0 %vm392_vm3, %v5448_v45  ;;  %4824 = vmatprep.subr.mxu1 %v5121_v5  ;;  %v3478_v45 = vpop.permute.xlu1 %3477  ;;  %v3656_v46 = vpop.permute.xlu0 %3655 }
 0x101   : > { %4675 = vmatpush1.msk.msra.mxu0 %vm395_vm1, %v3131_v41  ;;  %3203 = vmatprep.mubr.f32.mxu0 %v5121_v5  ;;  %v3483_v48 = vsel %vm1442_vm8, %v3478_v45, %v3480_v43 }
 0x102   : > { %4680 = vmatprep.subr.msk.mxu0 %vm395_vm1, %v3308_v42 }
 0x104   : > { %v3658_v47 = vpop.permute.xlu1 %3657  ;;  %v3654_v50 = vpop.permute.xlu0 %3653 }
 0x105   : > { %v3660_v49 = vsel %vm1623_vm9, %v3656_v46, %v3658_v47  ;;  %v3659_v55 = vsel %vm1623_vm9, %v3654_v50, %v3656_v46 }
 0x106   : > { %4822 = vmatmul.mubr.msk.f32.vlgmr.msra.gmra.mrb[2].mxu1 %vm392_vm3, %v5463_v51 }
 0x107   : > { %4825 = vmatpush3.msk.msra.mxu1 %vm395_vm1, %v3306_v40  ;;  %4826 = vmatprep.mubr.msk.f32.mxu1 %vm5122_vm0, %v5121_v5 }
 0x108   : > { %4676 = vmatmul.mubr.msk.f32.vlgmr.msra.gmra.mrb[2].mxu0 %vm392_vm3, %v5463_v51  ;;  %4829 = vmatprep.subr.mxu1 %v5121_v5  ;;  %v3834_v51 = vpop.permute.xlu0 %3833  ;;  %v3832_v52 = vpop.permute.xlu1 %3831 }
 0x109   : > { %4681 = vmatpush1.msk.msra.mxu0 %vm395_vm1, %v3307_v10  ;;  %3379 = vmatprep.mubr.f32.mxu0 %v5121_v5  ;;  %v3836_v57 = vsel %vm1804_vm10, %v3832_v52, %v3834_v51 }
 0x10a   : > { %4686 = vmatprep.subr.msk.mxu0 %vm395_vm1, %v3484_v44 }
 0x10c   : > { %v3830_v58 = vpop.permute.xlu1 %3829 }
 0x10d   : > { %v3835_v59 = vsel %vm1804_vm10, %v3830_v58, %v3832_v52 }
 0x10e   : > { %4827 = vmatmul.mubr.msk.f32.vlgmr.msra.gmra.mrb[2].mxu1 %vm392_vm3, %v5478_v60 }
 0x10f   : > { %4830 = vmatpush3.msk.msra.mxu1 %vm395_vm1, %v3482_v13  ;;  %4831 = vmatprep.mubr.msk.f32.mxu1 %vm5122_vm0, %v5121_v5 }
 0x110   : > { %4682 = vmatmul.mubr.msk.f32.vlgmr.msra.gmra.mrb[2].mxu0 %vm392_vm3, %v5478_v60  ;;  %4834 = vmatprep.subr.mxu1 %v5121_v5 }
 0x111   : > { %4687 = vmatpush1.msk.msra.mxu0 %vm395_vm1, %v3483_v48  ;;  %3555 = vmatprep.mubr.f32.mxu0 %v5121_v5 }
 0x112   : > { %4692 = vmatprep.subr.msk.mxu0 %vm395_vm1, %v3660_v49 }
 0x116   : > { %4832 = vmatmul.mubr.msk.f32.vlgmr.msra.gmra.mrb[2].mxu1 %vm392_vm3, %v5493_v2 }
 0x117   : > { %4835 = vmatpush3.msk.msra.mxu1 %vm395_vm1, %v3658_v47  ;;  %4836 = vmatprep.mubr.msk.f32.mxu1 %vm5122_vm0, %v5121_v5 }
 0x118   : > { %4688 = vmatmul.mubr.msk.f32.vlgmr.msra.gmra.mrb[2].mxu0 %vm392_vm3, %v5493_v2  ;;  %4839 = vmatprep.subr.mxu1 %v5121_v5 }
 0x119   : > { %4693 = vmatpush1.msk.msra.mxu0 %vm395_vm1, %v3659_v55  ;;  %3731 = vmatprep.mubr.f32.mxu0 %v5121_v5 }
 0x11a   : > { %4698 = vmatprep.subr.msk.mxu0 %vm395_vm1, %v3836_v57 }
 0x11e   : > { %4837 = vmatmul.mubr.msk.f32.vlgmr.msra.gmra.mrb[2].mxu1 %vm392_vm3, %v5508_v12 }
 0x11f   : > { %4840 = vmatpush3.msk.msra.mxu1 %vm395_vm1, %v3834_v51  ;;  %4841 = vmatprep.mubr.msk.f32.mxu1 %vm5122_vm0, %v5121_v5  ;;  %vm2350_vm0 = vcmask 654336  }
 0x120   : > { %4694 = vmatmul.mubr.msk.f32.vlgmr.msra.gmra.mrb[2].mxu0 %vm392_vm3, %v5508_v12  ;;  %v5150_v12 = vmov 1934713408  }
 0x121   : > { %4699 = vmatpush1.msk.msra.mxu0 %vm395_vm1, %v3835_v59  ;;  %3907 = vmatprep.mubr.f32.mxu0 %v5121_v5  ;;  %v2049_v14 = vunpack.c.l.s4 %v5150_v12  ;;  %vm2352_vm1 = vcmask 785408  }
 0x123   : > { %v2050_v20 = vunpack.c.0.s8 %v2049_v14 }
 0x125   : > { %v5686_v25 = vsub.s32 %v2050_v20, %v5262_v6 }
 0x126   : > { %4842 = vmatmul.mubr.msk.f32.vlgmr.msra.gmra.mrb[2].mxu1 %vm392_vm3, %v5523_v21 }
 0x128   : > { %4700 = vmatmul.mubr.msk.f32.vlgmr.msra.gmra.mrb[2].mxu0 %vm392_vm3, %v5523_v21 }
 0x1b5   : > { %v1952_v60 = vpop.f32.mrb[0].mxu1 }
 0x1b6   : > { %2006 = vrot.lane.b32.xlu0 %v1952_v60, %s5138_s16  ;;  %v4798_v61 = vpop.f32.mrb[1].mxu1 }
 0x1b7   : > { %v1881_v62 = vpop.f32.mrb[0].mxu0 }
 0x1b8   : > { %1963 = vrot.lane.b32.xlu1 %v1881_v62, %s5132_s25  ;;  %v1883_v63 = vpop.f32.mrb[1].mxu0 }
 0x1ba   : > { %1960 = vrot.lane.b32.xlu0 %v1881_v62, %s5126_s10 }
 0x1bc   : > { %1979 = vrot.lane.b32.xlu1 %v1881_v62, %s5139_s7 }
 0x1be   : > { %1966 = vrot.lane.b32.xlu0 %v1881_v62, %s5979_s8  ;;  %s348_s8 = scalar_lea.vmem %s5972_s2, %s5273_s24 }
 0x1bf   : > { %v359_v1 = vld [vmem:[%s348_s8] sm:$0xf]  ;;  %s5982_s8 = smov 32  }
 0x1c0   : > { %1969 = vrot.lane.b32.xlu1 %v1881_v62, %s5976_s12  ;;  %s5148_s12 = smov 40  }
 0x1c2   : > { %1972 = vrot.lane.b32.xlu0 %v1881_v62, %s5977_s15  ;;  %s5152_s15 = smov 48  }
 0x1c4   : > { %1975 = vrot.lane.b32.xlu1 %v1881_v62, %s5978_s17  ;;  %s5987_s17 = smov 64  }
 0x1c6   : > { %1988 = vrot.lane.b32.xlu0 %v1883_v63, %s5980_s27  ;;  %s5981_s27 = smov 22  }
 0x1c8   : > { %1985 = vrot.lane.b32.xlu1 %v1883_v63, %s5137_s13 }
 0x1ca   : > { %1994 = vrot.lane.b32.xlu0 %v1883_v63, %s5146_s29 }
 0x1cc   : > { %1991 = vrot.lane.b32.xlu1 %v1883_v63, %s5147_s11 }
 0x1ce   : > { %1981 = vrot.lane.b32.xlu0 %v1883_v63, %s5139_s7 }
 0x1d0   : > { %2004 = vrot.lane.b32.xlu1 %v1883_v63, %s5138_s16 }
 0x1d2   : > { %1997 = vrot.lane.b32.xlu0 %v1883_v63, %s5148_s12 }
 0x1d4   : > { %2000 = vrot.lane.b32.xlu1 %v1883_v63, %s5981_s27  ;;  %s5154_s27 = smov 16  }
 0x1d6   : > { %2011 = vrot.lane.b32.xlu0 %v1952_v60, %s5984_s9  ;;  %s5156_s9 = smov 80  }
 0x1d8   : > { %2365 = vperm.xlu1 %5018, %v359_v1  }
 0x1f9   : > { %v5678_v2 = vpop.f32.mrb[2].mxu1 }
 0x1fa   : > { %v4843_v3 = vpop.f32.mrb[3].mxu1 }
 0x1fb   : > { %v5680_v4 = vpop.f32.mrb[2].mxu0 }
 0x1fc   : > { %v5682_v7 = vpop.f32.mrb[3].mxu0 }
 0x228   : > { %v2007_v8 = vpop.permute.xlu0 %2006 }
 0x22a   : > { %v1964_v11 = vpop.permute.xlu1 %1963 }
 0x22b   : > { %v2014_v19 = vcombine.low %v1881_v62, %v1964_v11 }
 0x22c   : > { %v1961_v17 = vpop.permute.xlu0 %1960 }
 0x22d   : > { %v2021_v24 = vrot.slane %v2014_v19, %v5271_v9 }
 0x22e   : > { %v1980_v18 = vpop.permute.xlu1 %1979 }
 0x230   : > { %v1967_v21 = vpop.permute.xlu0 %1966 }
 0x231   : > { %v2022_v22 = vcombine.low %v1961_v17, %v1967_v21 }
 0x232   : > { %v1970_v23 = vpop.permute.xlu1 %1969 }
 0x233   : > { %v2029_v26 = vrot.slane %v2022_v22, %v5271_v9 }
 0x234   : > { %v1973_v27 = vpop.permute.xlu0 %1972 }
 0x235   : > { %v2046_v28 = vcombine.low %v2021_v24, %v2029_v26  ;;  %v2047_v29 = vcombine.high %v2021_v24, %v2029_v26 }
 0x236   : > { %v1976_v30 = vpop.permute.xlu1 %1975 }
 0x237   : > { %v2054_v31 = vrot.slane %v2046_v28, %v5686_v25  ;;  %v2061_v32 = vrot.slane %v2047_v29, %v5686_v25  ;;  %v2030_v40 = vcombine.low %v1970_v23, %v1976_v30 }
 0x238   : > { %v1989_v56 = vpop.permute.xlu0 %1988 }
 0x239   : > { %v4642_v54 = vcombine.low %v2054_v31, %v2061_v32  ;;  %v4644_v33 = vcombine.high %v2054_v31, %v2061_v32  ;;  %v2037_v47 = vrot.slane %v2030_v40, %v5271_v9 }
 0x23a   : > { %v1986_v34 = vpop.permute.xlu1 %1985 }
 0x23b   : > { %v2158_v53 = vrot.slane %v4642_v54, %v5271_v9  ;;  %v2174_v35 = vrot.slane %v4644_v33, %v5271_v9 }
 0x23c   : > { %v1995_v6 = vpop.permute.xlu0 %1994 }
 0x23d   : > { %v2090_v36 = vcombine.low %v1989_v56, %v1995_v6  ;;  %v2183_v37 = vcombine.high %v2158_v53, %v2174_v35  ;;  %v2182_v11 = vcombine.low %v2158_v53, %v2174_v35 }
 0x23e   : > { %v1992_v15 = vpop.permute.xlu1 %1991 }
 0x23f   : > { %v2082_v38 = vcombine.low %v1986_v34, %v1992_v15  ;;  %v2197_v39 = vrot.slane %v2183_v37, %v5686_v25  ;;  %v2097_v42 = vrot.slane %v2090_v36, %v5271_v9  ;;  %v5715_v26 = vrot.slane %v2182_v11, %v5686_v25 }
 0x240   : > { %v1982_v41 = vpop.permute.xlu0 %1981 }
 0x241   : > { %v2089_v16 = vrot.slane %v2082_v38, %v5271_v9  ;;  %v1983_v43 = vsel %vm392_vm3, %v1980_v18, %v1982_v41  ;;  %2291 = vrot.lane.b32.xlu0 %v2197_v39, %s5982_s8  ;;  %v2215_v46 = vcombine.high %v2197_v39, %v5121_v5  ;;  %v2214_v33 = vcombine.high %v5715_v26, %v5121_v5 }
 0x242   : > { %v2038_v13 = vcombine.low %v1973_v27, %v1983_v43  ;;  %v2005_v10 = vpop.permute.xlu1 %2004 }
 0x243   : > { %v2114_v44 = vcombine.low %v2089_v16, %v2097_v42  ;;  %v2115_v45 = vcombine.high %v2089_v16, %v2097_v42  ;;  %v2009_v49 = vsel %vm2008_vm11, %v2005_v10, %v2007_v8 }
 0x244   : > { %v2045_v48 = vrot.slane %v2038_v13, %v5271_v9  ;;  %v1998_v50 = vpop.permute.xlu0 %1997 }
 0x245   : > { %v2122_v51 = vrot.slane %v2114_v44, %v5686_v25  ;;  %v2129_v52 = vrot.slane %v2115_v45, %v5686_v25  ;;  %2295 = vrot.lane.b32.xlu0 %v2215_v46, %s5152_s15  ;;  %v2098_v60 = vcombine.low %v1998_v50, %v2009_v49 }
 0x246   : > { %v2062_v55 = vcombine.low %v2037_v47, %v2045_v48  ;;  %v2063_v57 = vcombine.high %v2037_v47, %v2045_v48  ;;  %v2001_v63 = vpop.permute.xlu1 %2000 }
 0x247   : > { %v4646_v58 = vcombine.low %v2122_v51, %v2129_v52  ;;  %v4648_v59 = vcombine.high %v2122_v51, %v2129_v52  ;;  %v2105_v17 = vrot.slane %v2098_v60, %v5271_v9 }
 0x248   : > { %v2070_v61 = vrot.slane %v2062_v55, %v5686_v25  ;;  %v2077_v62 = vrot.slane %v2063_v57, %v5686_v25  ;;  %v2012_v0 = vpop.permute.xlu0 %2011 }
 0x249   : > { %v2106_v1 = vcombine.low %v2001_v63, %v2012_v0  ;;  %v2226_v3 = vrot.slane %v4646_v58, %v5271_v9  ;;  %v2242_v8 = vrot.slane %v4648_v59, %v5271_v9 }
 0x24a   : > { %v4643_v12 = vcombine.low %v2070_v61, %v2077_v62  ;;  %v4645_v14 = vcombine.high %v2070_v61, %v2077_v62 }
 0x24b   : > { %v2113_v18 = vrot.slane %v2106_v1, %v5271_v9  ;;  %v2251_v19 = vcombine.high %v2226_v3, %v2242_v8  ;;  %v2250_v32 = vcombine.low %v2226_v3, %v2242_v8 }
 0x24c   : > { %v2165_v20 = vrot.slane %v4643_v12, %v5271_v9  ;;  %v2181_v21 = vrot.slane %v4645_v14, %v5271_v9 }
 0x24d   : > { %v2130_v22 = vcombine.low %v2105_v17, %v2113_v18  ;;  %v2131_v23 = vcombine.high %v2105_v17, %v2113_v18  ;;  %v2265_v24 = vrot.slane %v2251_v19, %v5686_v25  ;;  %v2258_v6 = vrot.slane %v2250_v32, %v5686_v25 }
 0x24e   : > { %v2198_v27 = vcombine.low %v2165_v20, %v2181_v21  ;;  %v2199_v31 = vcombine.high %v2165_v20, %v2181_v21 }
 0x24f   : > { %v2138_v28 = vrot.slane %v2130_v22, %v5686_v25  ;;  %v2145_v29 = vrot.slane %v2131_v23, %v5686_v25  ;;  %2319 = vrot.lane.b32.xlu1 %v2265_v24, %s5982_s8  ;;  %s5985_s8 = smov 96   ;;  %v2282_v38 = vcombine.high %v2258_v6, %v5121_v5  ;;  %v2283_v41 = vcombine.high %v2265_v24, %v5121_v5 }
 0x250   : > { %v2206_v30 = vrot.slane %v2198_v27, %v5686_v25  ;;  %v2213_v35 = vrot.slane %v2199_v31, %v5686_v25 }
 0x251   : > { %v4647_v56 = vcombine.low %v2138_v28, %v2145_v29  ;;  %v4649_v54 = vcombine.high %v2138_v28, %v2145_v29 }
 0x252   : > { %2299 = vrot.lane.b32.xlu0 %v2206_v30, %s5987_s17  ;;  %v2216_v40 = vcombine.high %v2206_v30, %v5121_v5  ;;  %v2217_v42 = vcombine.high %v2213_v35, %v5121_v5 }
 0x253   : > { %2287 = vrot.lane.b32.xlu1 %v2214_v33, %s5154_s27  ;;  %v2233_v34 = vrot.slane %v4647_v56, %v5271_v9  ;;  %v2249_v53 = vrot.slane %v4649_v54, %v5271_v9 }
 0x255   : > { %v2266_v36 = vcombine.low %v2233_v34, %v2249_v53  ;;  %v2267_v15 = vcombine.high %v2233_v34, %v2249_v53 }
 0x256   : > { %2307 = vrot.lane.b32.xlu0 %v2213_v35, %s5985_s8 }
 0x257   : > { %v2274_v37 = vrot.slane %v2266_v36, %v5686_v25  ;;  %v2281_v39 = vrot.slane %v2267_v15, %v5686_v25  ;;  %v5776_v10 = vpop.permute.xlu1 %2365 }
 0x259   : > { %2327 = vrot.lane.b32.xlu1 %v2274_v37, %s5987_s17  ;;  %v2284_v16 = vcombine.high %v2274_v37, %v5121_v5  ;;  %v2285_v43 = vcombine.high %v2281_v39, %v5121_v5  ;;  %s5992_s17 = smov 94  }
 0x25a   : > { %2315 = vrot.lane.b32.xlu0 %v2282_v38, %s5154_s27 }
 0x25d   : > { %2335 = vrot.lane.b32.xlu1 %v2281_v39, %s5985_s8  ;;  %s5991_s8 = smov 74  }
 0x25e   : > { %2303 = vrot.lane.b32.xlu0 %v2216_v40, %s5156_s9 }
 0x261   : > { %2323 = vrot.lane.b32.xlu1 %v2283_v41, %s5152_s15 }
 0x262   : > { %2311 = vrot.lane.b32.xlu0 %v2217_v42, %s5137_s13 }
 0x265   : > { %2331 = vrot.lane.b32.xlu1 %v2284_v16, %s5156_s9 }
 0x269   : > { %2339 = vrot.lane.b32.xlu1 %v2285_v43, %s5137_s13 }
 0x26d   : > { %3988 = vrot.lane.b32.xlu1 %v5680_v4, %s5126_s10  ;;  %s5993_s10 = smov 56  }
 0x271   : > { %3991 = vrot.lane.b32.xlu1 %v5680_v4, %s5132_s25  ;;  %s5994_s25 = smov 38  }
 0x275   : > { %3994 = vrot.lane.b32.xlu1 %v5680_v4, %s5991_s8  ;;  %s5995_s8 = smov 20  }
 0x279   : > { %4013 = vrot.lane.b32.xlu1 %v5682_v7, %s5137_s13 }
 0x27d   : > { %4016 = vrot.lane.b32.xlu1 %v5682_v7, %s5992_s17  ;;  %s356_s17 = scalar_lea.vmem %s5974_s4, %s5273_s24 }
 0x281   : > { %4019 = vrot.lane.b32.xlu1 %v5682_v7, %s5147_s11 }
 0x285   : > { %4022 = vrot.lane.b32.xlu1 %v5682_v7, %s5146_s29  ;;  %s5996_s29 = smov 114  }
 0x289   : > { %4007 = vrot.lane.b32.xlu1 %v5680_v4, %s5139_s7 }
 0x28d   : > { %4032 = vrot.lane.b32.xlu1 %v5682_v7, %s5138_s16 }
 0x291   : > { %4034 = vrot.lane.b32.xlu1 %v5678_v2, %s5138_s16  ;;  %s5997_s16 = smov 22  }
 0x295   : > { %3997 = vrot.lane.b32.xlu1 %v5680_v4, %s5993_s10 }
 0x299   : > { %4000 = vrot.lane.b32.xlu1 %v5680_v4, %s5994_s25 }
 0x29d   : > { %4003 = vrot.lane.b32.xlu1 %v5680_v4, %s5995_s8 }
 0x2a1   : > { %4025 = vrot.lane.b32.xlu1 %v5682_v7, %s5148_s12  ;;  %s5999_s12 = smov 64  }
 0x2a5   : > { %4038 = vrot.lane.b32.xlu1 %v5678_v2, %s5996_s29 }
 0x2b3   : > { %v2292_v13 = vpop.permute.xlu0 %2291 }
 0x2b7   : > { %v2296_v44 = vpop.permute.xlu0 %2295 }
 0x2c1   : > { %v2320_v45 = vpop.permute.xlu1 %2319 }
 0x2c4   : > { %v2300_v46 = vpop.permute.xlu0 %2299 }
 0x2c5   : > { %v2288_v47 = vpop.permute.xlu1 %2287 }
 0x2c6   : > { %v2343_v49 = vsel %vm2342_vm12, %v5715_v26, %v2288_v47 }
 0x2c7   : > { %v2345_v52 = vsel %vm2344_vm13, %v2343_v49, %v2292_v13 }
 0x2c8   : > { %v2308_v48 = vpop.permute.xlu0 %2307  ;;  %v2347_v57 = vsel %vm2346_vm14, %v2345_v52, %v2296_v44 }
 0x2c9   : > { %v2349_v59 = vsel %vm2348_vm15, %v2347_v57, %v2300_v46 }
 0x2cb   : > { %v2328_v50 = vpop.permute.xlu1 %2327 }
 0x2cc   : > { %v2316_v51 = vpop.permute.xlu0 %2315 }
 0x2cd   : > { %v2356_v2 = vsel %vm2342_vm12, %v2258_v6, %v2316_v51 }
 0x2ce   : > { %v2357_v61 = vsel %vm2344_vm13, %v2356_v2, %v2320_v45 }
 0x2cf   : > { %v2336_v55 = vpop.permute.xlu1 %2335 }
 0x2d0   : > { %v2304_v58 = vpop.permute.xlu0 %2303 }
 0x2d1   : > { %v2351_v62 = vsel %vm2350_vm0, %v2349_v59, %v2304_v58 }
 0x2d2   : > { %v2353_v1 = vsel %vm2352_vm1, %v2351_v62, %v2308_v48 }
 0x2d3   : > { %v2324_v60 = vpop.permute.xlu1 %2323 }
 0x2d4   : > { %v2358_v63 = vsel %vm2346_vm14, %v2357_v61, %v2324_v60  ;;  %v2312_v0 = vpop.permute.xlu0 %2311 }
 0x2d5   : > { %v2359_v8 = vsel %vm2348_vm15, %v2358_v63, %v2328_v50  ;;  %v2355_v11 = vsel %vm2354_vm2, %v2353_v1, %v2312_v0 }
 0x2d6   : > { %v5792_v14 = vadd.f32 %v5776_v10, %v2355_v11 }
 0x2d7   : > { %v2332_v3 = vpop.permute.xlu1 %2331 }
 0x2d8   : > { %v2360_v12 = vsel %vm2350_vm0, %v2359_v8, %v2332_v3  ;;  %v2371_v22 = vsel %vm2370_vm4, %v5792_v14, 0.0 }
 0x2d9   : > { %v2361_v18 = vsel %vm2352_vm1, %v2360_v12, %v2336_v55 }
 0x2db   : > { %v2340_v17 = vpop.permute.xlu1 %2339 }
 0x2dc   : > { %v2362_v19 = vsel %vm2354_vm2, %v2361_v18, %v2340_v17 }
 0x2dd   : > { %v5797_v20 = vadd.f32 %v5776_v10, %v2362_v19 }
 0x2df   : > { %v3989_v21 = vpop.permute.xlu1 %3988  ;;  %v2372_v23 = vsel %vm2370_vm4, %v5797_v20, 0.0 }
 0x2e0   : > { %v2373_v24 = vadd.f32 %v2372_v23, %v2371_v22 }
 0x2e2   : > { %2374 = vadd.xlane.f32.xlu0 %v2373_v24 }
 0x2e3   : > { %v3992_v26 = vpop.permute.xlu1 %3991 }
 0x2e4   : > { %v4041_v27 = vcombine.low %v5680_v4, %v3992_v26 }
 0x2e6   : > { %v4048_v30 = vrot.slane %v4041_v27, %v5271_v9 }
 0x2e7   : > { %v3995_v28 = vpop.permute.xlu1 %3994 }
 0x2e8   : > { %v4049_v29 = vcombine.low %v3989_v21, %v3995_v28 }
 0x2ea   : > { %v4056_v31 = vrot.slane %v4049_v29, %v5271_v9 }
 0x2eb   : > { %v4014_v32 = vpop.permute.xlu1 %4013 }
 0x2ec   : > { %v4073_v56 = vcombine.low %v4048_v30, %v4056_v31  ;;  %v4074_v54 = vcombine.high %v4048_v30, %v4056_v31 }
 0x2ee   : > { %v4081_v33 = vrot.slane %v4073_v56, %v5686_v25  ;;  %v4088_v34 = vrot.slane %v4074_v54, %v5686_v25 }
 0x2ef   : > { %v4017_v53 = vpop.permute.xlu1 %4016 }
 0x2f0   : > { %v4703_v35 = vcombine.low %v4081_v33, %v4088_v34  ;;  %v4705_v6 = vcombine.high %v4081_v33, %v4088_v34 }
 0x2f2   : > { %v4185_v36 = vrot.slane %v4703_v35, %v5271_v9  ;;  %v4201_v4 = vrot.slane %v4705_v6, %v5271_v9 }
 0x2f3   : > { %v4020_v37 = vpop.permute.xlu1 %4019 }
 0x2f4   : > { %v4109_v15 = vcombine.low %v4014_v32, %v4020_v37  ;;  %v4209_v38 = vcombine.low %v4185_v36, %v4201_v4  ;;  %v4210_v47 = vcombine.high %v4185_v36, %v4201_v4 }
 0x2f6   : > { %v4116_v41 = vrot.slane %v4109_v15, %v5271_v9  ;;  %v5815_v16 = vrot.slane %v4209_v38, %v5686_v25  ;;  %v4224_v52 = vrot.slane %v4210_v47, %v5686_v25 }
 0x2f7   : > { %v4023_v39 = vpop.permute.xlu1 %4022 }
 0x2f8   : > { %v4117_v40 = vcombine.low %v4017_v53, %v4023_v39  ;;  %4009 = vrot.lane.b32.xlu0 %v5682_v7, %s5139_s7  ;;  %v4241_v46 = vcombine.high %v5815_v16, %v5121_v5  ;;  %s5998_s7 = smov 32   ;;  %v4242_v55 = vcombine.high %v4224_v52, %v5121_v5 }
 0x2fa   : > { %v4124_v42 = vrot.slane %v4117_v40, %v5271_v9 }
 0x2fb   : > { %v4008_v61 = vpop.permute.xlu1 %4007 }
 0x2fc   : > { %v4141_v43 = vcombine.low %v4116_v41, %v4124_v42  ;;  %v4142_v13 = vcombine.high %v4116_v41, %v4124_v42  ;;  %4028 = vrot.lane.b32.xlu0 %v5682_v7, %s5997_s16 }
 0x2fe   : > { %v4149_v44 = vrot.slane %v4141_v43, %v5686_v25  ;;  %v4156_v45 = vrot.slane %v4142_v13, %v5686_v25 }
 0x2ff   : > { %v4033_v62 = vpop.permute.xlu1 %4032 }
 0x300   : > { %v4707_v48 = vcombine.low %v4149_v44, %v4156_v45  ;;  %v4709_v49 = vcombine.high %v4149_v44, %v4156_v45  ;;  %4314 = vrot.lane.b32.xlu0 %v4241_v46, %s5154_s27 }
 0x302   : > { %v4253_v50 = vrot.slane %v4707_v48, %v5271_v9  ;;  %v4269_v51 = vrot.slane %v4709_v49, %v5271_v9 }
 0x303   : > { %v4035_v63 = vpop.permute.xlu1 %4034 }
 0x304   : > { %4318 = vrot.lane.b32.xlu0 %v4224_v52, %s5998_s7  ;;  %v4277_v7 = vcombine.low %v4253_v50, %v4269_v51  ;;  %v4278_v58 = vcombine.high %v4253_v50, %v4269_v51  ;;  %v4036_v23 = vsel %vm2008_vm11, %v4033_v62, %v4035_v63 }
 0x306   : > { %v5830_v2 = vrot.slane %v4277_v7, %v5686_v25  ;;  %v4292_v59 = vrot.slane %v4278_v58, %v5686_v25 }
 0x307   : > { %v3998_v0 = vpop.permute.xlu1 %3997 }
 0x308   : > { %4322 = vrot.lane.b32.xlu0 %v4242_v55, %s5152_s15  ;;  %v4309_v57 = vcombine.high %v5830_v2, %v5121_v5  ;;  %v4310_v60 = vcombine.high %v4292_v59, %v5121_v5 }
 0x30a   : > { %4342 = vrot.lane.b32.xlu1 %v4309_v57, %s5154_s27  ;;  %s6000_s27 = smov 96  }
 0x30b   : > { %v4001_v1 = vpop.permute.xlu1 %4000 }
 0x30e   : > { %4346 = vrot.lane.b32.xlu1 %v4292_v59, %s5998_s7 }
 0x30f   : > { %v4004_v3 = vpop.permute.xlu1 %4003 }
 0x310   : > { %v4057_v18 = vcombine.low %v3998_v0, %v4004_v3 }
 0x312   : > { %4350 = vrot.lane.b32.xlu1 %v4310_v60, %s5152_s15  ;;  %v4064_v28 = vrot.slane %v4057_v18, %v5271_v9 }
 0x313   : > { %v4026_v12 = vpop.permute.xlu1 %4025 }
 0x314   : > { %v4125_v26 = vcombine.low %v4026_v12, %v4036_v23 }
 0x316   : > { %v4132_v34 = vrot.slane %v4125_v26, %v5271_v9 }
 0x317   : > { %v4039_v29 = vpop.permute.xlu1 %4038 }
 0x36f   : > { %v2375_v8 = vpop.xlane.xlu0 %2374 }
 0x370   : > { %v2376_v11 = vrot.slane %v2375_v8, 4 }
 0x372   : > { %v2377_v17 = vadd.f32 %v2376_v11, %v2375_v8 }
 0x373   : > { %v4010_v19 = vpop.permute.xlu0 %4009 }
 0x374   : > { %v2378_v21 = vrot.slane %v2377_v17, 2  ;;  %v4011_v22 = vsel %vm392_vm3, %v4008_v61, %v4010_v19 }
 0x375   : > { %v4065_v24 = vcombine.low %v4001_v1, %v4011_v22 }
 0x376   : > { %v2379_v27 = vadd.f32 %v2378_v21, %v2377_v17 }
 0x377   : > { %v4072_v30 = vrot.slane %v4065_v24, %v5271_v9  ;;  %v4029_v31 = vpop.permute.xlu0 %4028 }
 0x378   : > { %v4133_v32 = vcombine.low %v4029_v31, %v4039_v29  ;;  %v2380_v56 = vrot.slane %v2379_v27, 1 }
 0x379   : > { %v4089_v54 = vcombine.low %v4064_v28, %v4072_v30  ;;  %v4090_v33 = vcombine.high %v4064_v28, %v4072_v30 }
 0x37a   : > { %v4140_v53 = vrot.slane %v4133_v32, %v5271_v9  ;;  %v2381_v35 = vadd.f32 %v2380_v56, %v2379_v27 }
 0x37b   : > { %v4097_v6 = vrot.slane %v4089_v54, %v5686_v25  ;;  %v4104_v36 = vrot.slane %v4090_v33, %v5686_v25 }
 0x37c   : > { %v4157_v4 = vcombine.low %v4132_v34, %v4140_v53  ;;  %v4158_v37 = vcombine.high %v4132_v34, %v4140_v53  ;;  %4911 = vpush %v2381_v35  ;;  %v4343_v1 = vpop.permute.xlu1 %4342 }
 0x37d   : > { %v4704_v15 = vcombine.low %v4097_v6, %v4104_v36  ;;  %v4706_v38 = vcombine.high %v4097_v6, %v4104_v36  ;;  %v4376_v28 = vsel %vm2342_vm12, %v5830_v2, %v4343_v1 }
 0x37e   : > { %v4165_v39 = vrot.slane %v4157_v4, %v5686_v25  ;;  %v4172_v40 = vrot.slane %v4158_v37, %v5686_v25 }
 0x37f   : > { %v4192_v41 = vrot.slane %v4704_v15, %v5271_v9  ;;  %v4208_v42 = vrot.slane %v4706_v38, %v5271_v9  ;;  %v361_v15 = vld [vmem:[%s356_s17] sm:$0xf] }
 0x380   : > { %v4708_v43 = vcombine.low %v4165_v39, %v4172_v40  ;;  %v4710_v13 = vcombine.high %v4165_v39, %v4172_v40  ;;  %v4347_v3 = vpop.permute.xlu1 %4346 }
 0x381   : > { %v4225_v44 = vcombine.low %v4192_v41, %v4208_v42  ;;  %v4226_v52 = vcombine.high %v4192_v41, %v4208_v42  ;;  %v4377_v30 = vsel %vm2344_vm13, %v4376_v28, %v4347_v3 }
 0x382   : > { %v4260_v45 = vrot.slane %v4708_v43, %v5271_v9  ;;  %v4276_v46 = vrot.slane %v4710_v13, %v5271_v9 }
 0x383   : > { %v4233_v47 = vrot.slane %v4225_v44, %v5686_v25  ;;  %v4240_v9 = vrot.slane %v4226_v52, %v5686_v25 }
 0x384   : > { %v4293_v48 = vcombine.low %v4260_v45, %v4276_v46  ;;  %v4294_v7 = vcombine.high %v4260_v45, %v4276_v46  ;;  %v4351_v8 = vpop.permute.xlu1 %4350 }
 0x385   : > { %4326 = vrot.lane.b32.xlu0 %v4233_v47, %s5999_s12  ;;  %v4243_v50 = vcombine.high %v4233_v47, %v5121_v5  ;;  %v4244_v57 = vcombine.high %v4240_v9, %v5121_v5 }
 0x386   : > { %v4301_v49 = vrot.slane %v4293_v48, %v5686_v25  ;;  %v4308_v55 = vrot.slane %v4294_v7, %v5686_v25 }
 0x388   : > { %4354 = vrot.lane.b32.xlu1 %v4301_v49, %s5999_s12  ;;  %v4311_v51 = vcombine.high %v4301_v49, %v5121_v5  ;;  %v4312_v58 = vcombine.high %v4308_v55, %v5121_v5 }
 0x38c   : > { %4330 = vrot.lane.b32.xlu1 %v4243_v50, %s5156_s9 }
 0x390   : > { %4358 = vrot.lane.b32.xlu1 %v4311_v51, %s5156_s9 }
 0x394   : > { %4334 = vrot.lane.b32.xlu1 %v4240_v9, %s6000_s27 }
 0x398   : > { %4362 = vrot.lane.b32.xlu1 %v4308_v55, %s6000_s27  ;;  %s5157_s27 = smov [#allocation3]  }
 0x39c   : > { %4338 = vrot.lane.b32.xlu1 %v4244_v57, %s5137_s13 }
 0x3a0   : > { %4366 = vrot.lane.b32.xlu1 %v4312_v58, %s5137_s13 }
 0x3ad   : > { %s4912_s11 = spop %4911 }
 0x3ae   : > { %s2383_s15 = smul.f32 0.0009765625, %s4912_s11  ;;  %s352_s11 = scalar_lea.vmem %s5973_s3, %s5273_s24 }
 0x3af   : > { %s4592_s24 = sshll.u32 %s5256_s14, 4 }
 0x3b0   : > { %v2384_v59 = vstv %s2383_s15  ;;  %s339_s15 = scalar_lea.vmem [#allocation3], %s4592_s24 }
 0x3b1   : > { %v5871_v60 = vsub.f32 %v5792_v14, %v2384_v59  ;;  %v5874_v61 = vsub.f32 %v5797_v20, %v2384_v59  ;;  %v4315_v14 = vpop.permute.xlu0 %4314 }
 0x3b2   : > { %v4369_v21 = vsel %vm2342_vm12, %v5815_v16, %v4315_v14  ;;  %v4378_v16 = vsel %vm2346_vm14, %v4377_v30, %v4351_v8 }
 0x3b3   : > { %v2387_v25 = vmul.f32 %v5871_v60, %v5871_v60  ;;  %v2388_v62 = vmul.f32 %v5874_v61, %v5874_v61 }
 0x3b5   : > { %v2389_v63 = vsel %vm2370_vm4, %v2387_v25, 0.0  ;;  %v2390_v5 = vsel %vm2370_vm4, %v2388_v62, 0.0  ;;  %v4319_v20 = vpop.permute.xlu0 %4318  ;;  %v360_v62 = vld [vmem:[%s352_s11] sm:$0xf]  ;;  %s5044_s11 = sshll.u32 %s5157_s27, 4  ;;  %s5045_s11 = int_to_ptr.vmem [resolvable:$false] %s5044_s11 }
 0x3b6   : > { %v2391_v0 = vadd.f32 %v2390_v5, %v2389_v63  ;;  %v4370_v23 = vsel %vm2344_vm13, %v4369_v21, %v4319_v20  ;;  %s5046_s24 = scalar_lea.vmem %s5045_s11, 512 }
 0x3b8   : > { %2392 = vadd.xlane.f32.xlu0 %v2391_v0 }
 0x3b9   : > { %v4323_v18 = vpop.permute.xlu0 %4322 }
 0x3ba   : > { %v4371_v26 = vsel %vm2346_vm14, %v4370_v23, %v4323_v18 }
 0x3f7   : > { %v4327_v22 = vpop.permute.xlu0 %4326 }
 0x3f8   : > { %v4372_v27 = vsel %vm2348_vm15, %v4371_v26, %v4327_v22 }
 0x3fa   : > { %v4355_v11 = vpop.permute.xlu1 %4354 }
 0x3fb   : > { %v4379_v54 = vsel %vm2348_vm15, %v4378_v16, %v4355_v11 }
 0x3fe   : > { %v4331_v12 = vpop.permute.xlu1 %4330 }
 0x3ff   : > { %v4373_v29 = vsel %vm2350_vm0, %v4372_v27, %v4331_v12 }
 0x402   : > { %v4359_v17 = vpop.permute.xlu1 %4358 }
 0x403   : > { %v4380_v33 = vsel %vm2350_vm0, %v4379_v54, %v4359_v17 }
 0x406   : > { %v4335_v19 = vpop.permute.xlu1 %4334 }
 0x407   : > { %v4374_v31 = vsel %vm2352_vm1, %v4373_v29, %v4335_v19 }
 0x40a   : > { %v4363_v24 = vpop.permute.xlu1 %4362 }
 0x40b   : > { %v4381_v34 = vsel %vm2352_vm1, %v4380_v33, %v4363_v24 }
 0x40e   : > { %v4339_v32 = vpop.permute.xlu1 %4338 }
 0x40f   : > { %v4375_v56 = vsel %vm2354_vm2, %v4374_v31, %v4339_v32 }
 0x410   : > { %v4383_v2 = vadd.f32 %v4375_v56, %v5776_v10 }
 0x412   : > { %v4367_v53 = vpop.permute.xlu1 %4366  ;;  %v4385_v36 = vsel %vm2370_vm4, %v4383_v2, 0.0 }
 0x413   : > { %v4382_v35 = vsel %vm2354_vm2, %v4381_v34, %v4367_v53 }
 0x414   : > { %v4384_v6 = vadd.f32 %v4382_v35, %v5776_v10 }
 0x416   : > { %v4386_v4 = vsel %vm2370_vm4, %v4384_v6, 0.0 }
 0x417   : > { %v4387_v37 = vadd.f32 %v4386_v4, %v4385_v36 }
 0x419   : > { %4388 = vadd.xlane.f32.xlu1 %v4387_v37 }
 0x42a   : > { %2418 = vperm.xlu1 %5018, %v361_v15  }
 0x445   : > { %v2393_v38 = vpop.xlane.xlu0 %2392 }
 0x446   : > { %v2394_v39 = vrot.slane %v2393_v38, 4 }
 0x448   : > { %v2395_v40 = vadd.f32 %v2394_v39, %v2393_v38 }
 0x44a   : > { %v2396_v41 = vrot.slane %v2395_v40, 2 }
 0x44c   : > { %v2397_v42 = vadd.f32 %v2396_v41, %v2395_v40 }
 0x44e   : > { %v2398_v43 = vrot.slane %v2397_v42, 1 }
 0x450   : > { %v2399_v13 = vadd.f32 %v2398_v43, %v2397_v42 }
 0x452   : > { %4913 = vpush %v2399_v13 }
 0x483   : > { %s4914_s10 = spop %4913 }
 0x484   : > { %s2401_s25 = smul.f32 0.0009765625, %s4914_s10 }
 0x486   : > { %s2402_s8 = sadd.f32 1e-05, %s2401_s25  ;;  %s4717_s25 = sshll.u32 %s5110_s21, 7 }
 0x487   : > { %s4440_s21 = scalar_lea.sflag [#allocation4], %s5256_s14 }
 0x488   : > { %v2403_v10 = vstv %s2402_s8  ;;  %s4456_s8 = sshll.u32 %s339_s15, 4  ;;  %s5921_s8 = int_to_ptr.vmem [resolvable:$true] %s4456_s8 }
 0x489   : > { %5036 = vrsqrt.f32 %v2403_v10  ;;  %s5040_s12 = scalar_lea.vmem %s5921_s8, 256  ;;  %p5047_p4 = scmp.lt.s32.totalorder %s5921_s8, %s5045_s11 }
 0x48a   : > { %p5041_p1 = scmp.ne.s32.totalorder %s5921_s8, %s5040_s12  ;;  %p5048_p6 = scmp.lt.s32.totalorder %s5046_s24, %s5040_s12 }
 0x48c   : > { %p5042_p2 = pnand %p5041_p1, %p5230_p5  ;;  %p5049_p7 = por %p5048_p6, %p5047_p4 }
 0x48e   : > { %p5043_p3 = pneg %p5042_p2 }
 0x490   : > { %p5050_p8 = pnand %p5049_p7, %p5043_p3 }
 0x493   : > { %v5037_v44 = vpop.eup %5036 }
 0x494   : > { %4915 = vpush %v5037_v44 }
 0x4a6   : > { %v4389_v45 = vpop.xlane.xlu1 %4388 }
 0x4a7   : > { %v4390_v46 = vrot.slane %v4389_v45, 4 }
 0x4a9   : > { %v4391_v47 = vadd.f32 %v4390_v46, %v4389_v45 }
 0x4aa   : > { %v2419_v19 = vpop.permute.xlu1 %2418 }
 0x4ab   : > { %v4392_v48 = vrot.slane %v4391_v47, 2 }
 0x4ad   : > { %v4393_v49 = vadd.f32 %v4392_v48, %v4391_v47 }
 0x4af   : > { %v4394_v50 = vrot.slane %v4393_v49, 1 }
 0x4b1   : > { %v4395_v51 = vadd.f32 %v4394_v50, %v4393_v49 }
 0x4b3   : > { %4917 = vpush %v4395_v51 }
 0x4c5   : > { %s4916_s29 = spop %4915 }
 0x4c6   : > { %v2406_v1 = vstv %s4916_s29 }
 0x4c7   : > { %v2407_v8 = vmul.f32 %v2406_v1, %v5871_v60  ;;  %v2408_v14 = vmul.f32 %v2406_v1, %v5874_v61 }
 0x4e4   : > { %s4918_s16 = spop %4917 }
 0x4e5   : > { %s4397_s7 = smul.f32 0.0009765625, %s4918_s16 }
 0x4e7   : > { %v4398_v52 = vstv %s4397_s7  ;;  %s5919_s7 = scalar_lea.hbm %s5975_s5, %s4717_s25 }
 0x4e8   : > { %v4399_v9 = vsub.f32 %v4383_v2, %v4398_v52  ;;  %v4400_v7 = vsub.f32 %v4384_v6, %v4398_v52 }
 0x4ea   : > { %v4401_v55 = vmul.f32 %v4399_v9, %v4399_v9  ;;  %v4402_v57 = vmul.f32 %v4400_v7, %v4400_v7 }
 0x4ec   : > { %v4403_v58 = vsel %vm2370_vm4, %v4401_v55, 0.0  ;;  %v4404_v59 = vsel %vm2370_vm4, %v4402_v57, 0.0 }
 0x4ed   : > { %v4405_v25 = vadd.f32 %v4404_v59, %v4403_v58 }
 0x4ef   : > { %4406 = vadd.xlane.f32.xlu0 %v4405_v25 }
 0x505   : > { %2411 = vperm.xlu0 %5019, %v360_v62  }
 0x57c   : > { %v4407_v63 = vpop.xlane.xlu0 %4406 }
 0x57d   : > { %v4408_v5 = vrot.slane %v4407_v63, 4 }
 0x57f   : > { %v4409_v0 = vadd.f32 %v4408_v5, %v4407_v63 }
 0x581   : > { %v4410_v3 = vrot.slane %v4409_v0, 2 }
 0x583   : > { %v4411_v11 = vadd.f32 %v4410_v3, %v4409_v0 }
 0x584   : > { %v2412_v12 = vpop.permute.xlu0 %2411 }
 0x585   : > { %v2414_v20 = vmul.f32 %v2412_v12, %v2407_v8  ;;  %v2415_v17 = vmul.f32 %v2412_v12, %v2408_v14  ;;  %v4412_v18 = vrot.slane %v4411_v11, 1 }
 0x587   : > { %v2421_v21 = vadd.f32 %v2419_v19, %v2414_v20  ;;  %v2422_v22 = vadd.f32 %v2419_v19, %v2415_v17  ;;  %v4413_v23 = vadd.f32 %v4412_v18, %v4411_v11 }
 0x589   : > { %vm2423_vm3 = vcmp.gt.f32.partialorder %v2421_v21, 0.0  ;;  %vm2424_vm5 = vcmp.gt.f32.partialorder %v2422_v22, 0.0  ;;  %v2425_v24 = vmul.f32 0.2, %v2421_v21  ;;  %v2426_v26 = vmul.f32 0.2, %v2422_v22  ;;  %4919 = vpush %v4413_v23 }
 0x58b   : > { %v2427_v27 = vsel %vm2423_vm3, %v2421_v21, %v2425_v24  ;;  %v2428_v28 = vsel %vm2424_vm5, %v2422_v22, %v2426_v26 }
 0x58c   : > { %v2431_v60 = vcombine.low %v2427_v27, %v2428_v28 }
 0x58e   : > { %2433 = vst [vmem:[%s339_s15] sm:$0xff] %v2431_v60 }
 0x5ba   : > { %s4920_s9 = spop %4919 }
 0x5bb   : > { %s4415_s13 = smul.f32 0.0009765625, %s4920_s9 }
 0x5bd   : > { %s4416_s17 = sadd.f32 1e-05, %s4415_s13 }
 0x5bf   : > { %v4417_v61 = vstv %s4416_s17 }
 0x5c0   : > { %5038 = vrsqrt.f32 %v4417_v61 }
 0x5ca   : > { %v5039_v29 = vpop.eup %5038 }
 0x5cb   : > { %4921 = vpush %v5039_v29 }
 0x5fc   : > { %s4922_s10 = spop %4921 }
 0x5fd   : > { %v4420_v30 = vstv %s4922_s10 }
 0x5fe   : > { %v4421_v31 = vmul.f32 %v4420_v30, %v4399_v9  ;;  %v4422_v32 = vmul.f32 %v4420_v30, %v4400_v7 }
 0x600   : > { %v4423_v16 = vmul.f32 %v4421_v31, %v2412_v12  ;;  %v4424_v56 = vmul.f32 %v4422_v32, %v2412_v12 }
 0x602   : > { %v4425_v54 = vadd.f32 %v4423_v16, %v2419_v19  ;;  %v4426_v33 = vadd.f32 %v4424_v56, %v2419_v19 }
 0x604   : > { %vm4427_vm6 = vcmp.gt.f32.partialorder %v4425_v54, 0.0  ;;  %vm4428_vm7 = vcmp.gt.f32.partialorder %v4426_v33, 0.0  ;;  %v4429_v34 = vmul.f32 0.2, %v4425_v54  ;;  %v4430_v2 = vmul.f32 0.2, %v4426_v33 }
 0x606   : > { %v4431_v53 = vsel %vm4427_vm6, %v4425_v54, %v4429_v34  ;;  %v4432_v35 = vsel %vm4428_vm7, %v4426_v33, %v4430_v2 }
 0x607   : > { %v4435_v6 = vcombine.low %v4431_v53, %v4432_v35 }
 0x609   : > { %4711 = vst [vmem:[%s339_s15 + $0x8] sm:$0xff] %v4435_v6 }
 0x60a   : > { %5053 = shalt.err (!%p5050_p8)
}
 0x60b   : > { %s5054_s15 = scalar_lea.hbm %s5919_s7, 256  ;;  %s5058_s17 = scalar_lea.hbm %s5975_s5, 512 }
 0x60c   : > { %p5055_p11 = scmp.ne.s32.totalorder %s5919_s7, %s5054_s15  ;;  %p5059_p0 = scmp.lt.u32.totalorder %s5919_s7, %s5975_s5 }
 0x60d   : > { %p5060_p1 = scmp.lt.u32.totalorder %s5058_s17, %s5054_s15  ;;  %p5062_p3 = scmp.lt.u32.totalorder %s5054_s15, %s5919_s7 }
 0x60e   : > { %p5056_p12 = pnand %p5055_p11, %p5230_p5 }
 0x60f   : > { %p5061_p2 = por %p5060_p1, %p5059_p0 }
 0x610   : > { %p5057_p13 = pneg %p5056_p12 }
 0x611   : > { %p5063_p4 = por %p5062_p3, %p5061_p2 }
 0x613   : > { %p5064_p6 = pnand %p5063_p4, %p5057_p13 }
 0x615   : > { %5067 = shalt.err (!%p5064_p6)
}
 0x616   : > { %s5158_s29 = smov 128   ;;  %s5159_s16 = smov 256  }
 0x617   : > { %s5160_s12 = smov 8  }
 0x618   : > { %4923 = dma.vmem_to_hbm [thread:$0]  (%p5230_p5), %s5921_s8, 256, %s5919_s7, %s4440_s21, %s5158_s29, %s5159_s16, %s5160_s12  }
 0x619 PF: > { %s4471_s27 = sand.u32 1, %s5098_s18   ;;  %p4926_p7 = pnand %p4589_p10, %p5241_p9 }
 0x61a   : > { %s4472_s11 = scalar_lea.sflag [#allocation4], %s4471_s27 }
 0x61b   : > { %5093 = dma.done.wait (!%p4926_p7), %s4472_s11, 256  }
 0x61c   : > { %5095 = vsyncadd (!%p4926_p7), %s4472_s11, 4294967040  ;;  %s18_s23 = sadd.s32 1, %s5118_s23   ;;  %s6001_s18 = smov %s5102_s19 }
 0x61d   : > { %p15_p8 = scmp.ge.s32.totalorder %s18_s23, 4   ;;  %s6002_s19 = smov %s5106_s20 }
 0x61e   : > { %s6003_s20 = smov %s5239_s30  ;;  %s6004_s21 = smov %s5114_s22 }
 0x61f   : > { %s6005_s22 = smov %s6007_s26  ;;  %17 = sbr.rel (!%p15_p8) target bundleno = 4 (0x4), region = 135 }
 0x626   :  { %4477 = vsyncpa [#allocation4], 1 }
 0x627   :  { %4479 = vsyncpa [#allocation4 + $0x1], 1 }

</bundles_post_ra>
